<compile_context>
chip_gen: v6e
topology: v6e:2x2x1
jax: 0.10.0
libtpu: 0.0.40
codegen_flags: <defaults>
</compile_context>

<pallas_src>
import math
import functools

import jax
import jax.numpy as jnp
from jax.experimental import pallas as pl
from jax.experimental.pallas import tpu as pltpu


# ----------------------------- helpers ---------------------------------------
def _node_group_size(num_nodes, dh):
    """Smallest nodes-per-group so the group's ctx width (npg*dh) is a multiple
    of 128 lanes (keeps slices/matmuls lane-aligned).  Falls back to a single
    group (= original block-diagonal formulation) if no such split exists."""
    for npg in range(1, num_nodes + 1):
        if num_nodes % npg == 0 and (npg * dh) % 128 == 0:
            return npg
    return num_nodes


def _pick_batch_tile(B, batch_tile):
    """Batch-tile selection.  Large B: use batch_tile (multiple of 8).  Small
    but splittable B: ~half, rounded to a multiple of 8, so grid_b >= 2 and the
    v7x megacore gets balanced step counts.  Tiny B: single full tile."""
    if B > batch_tile:
        return batch_tile
    if B >= 16 and B % 8 == 0:
        half = ((-(-B // 2)) + 7) // 8 * 8
        return min(half, B)
    return B


def _const_spec(shape):
    """BlockSpec for a grid-constant operand (index_map == (0,...) everywhere).
    Single-buffered when the installed Pallas supports pipeline_mode (saves the
    default double-buffer VMEM); gracefully falls back otherwise."""
    index_map = lambda bt, bd: (0,) * len(shape)
    try:
        return pl.BlockSpec(shape, index_map, pipeline_mode=pl.Buffered(1))
    except (TypeError, AttributeError):
        return pl.BlockSpec(shape, index_map)


# ----------------------------- Fused kernel ----------------------------------
def fused_input_kernel(xb_ref, wb_ref, bb_ref, wx_ref, wctx_ref, bfull_ref,
                       red_ref, up_ref, gamma_ref, beta_ref, o_ref,
                       *, n_groups, group_in, group_out, eps, approximate):
    # xb_ref   : [TB, nodes]          raw EEG readings for this (band, batch tile)
    # wb_ref   : [nodes, nodes*dh]    per-band projection weight (pre-transposed)
    # bb_ref   : [1, nodes*dh]
    # wx_ref   : [nodes, nodes*d]     kron(I_nodes, node_w^T @ Wc_top)  (rank-1 fold)
    # wctx_ref : [npg*dh, npg*d]      SHARED per-node-group block kron(I_npg, Wc_bot)
    # bfull_ref: [1, nodes*d]         tiled (node_b @ Wc_top + comb_b)
    # red_ref  : [npg*d, npg]         kron(I_npg, ones(d,1)/d)  -> per-node mean
    # up_ref   : [npg, npg*d]         kron(I_npg, ones(1,d))    -> broadcast back
    # gamma/beta: [1, npg*d]          LayerNorm affine, tiled over the group
    # o_ref    : [TB, nodes*d]
    f32 = jnp.float32
    x = xb_ref[...]                                                  # [TB, nodes]

    # Per-band projection + GELU (tanh approx -> EUP slot).
    ctx = jnp.dot(x, wb_ref[...], preferred_element_type=f32) + bb_ref[...]
    ctx = jax.nn.gelu(ctx, approximate=approximate)                  # [TB, nodes*dh]

    # Node-embedding branch folded in (rank-1) + bias, full lane width.
    hx = jnp.dot(x, wx_ref[...], preferred_element_type=f32) + bfull_ref[...]

    wctx = wctx_ref[...]
    red, up = red_ref[...], up_ref[...]
    gam, bet = gamma_ref[...], beta_ref[...]

    # Static unroll over lane-aligned node groups; every slice / store below is
    # a multiple of 128 lanes, every store is full-sublane (unmasked vst).
    for g in range(n_groups):
        cg = ctx[:, g * group_in:(g + 1) * group_in]                 # [TB, GK]
        hg = (hx[:, g * group_out:(g + 1) * group_out]
              + jnp.dot(cg, wctx, preferred_element_type=f32))       # [TB, GN]
        hg = jax.nn.gelu(hg, approximate=approximate)

        # Per-node LayerNorm over d_model via tiny MXU reduce/expand matmuls;
        # the sqrt(d_model) pre-scale of the reference is folded into eps.
        m = jnp.dot(hg, red, preferred_element_type=f32)             # [TB, npg]
        m2 = jnp.dot(hg * hg, red, preferred_element_type=f32)       # [TB, npg]
        mean = jnp.dot(m, up, preferred_element_type=f32)            # [TB, GN]
        msq = jnp.dot(m2, up, preferred_element_type=f32)            # [TB, GN]
        var = msq - mean * mean

        o_ref[:, g * group_out:(g + 1) * group_out] = (
            ((hg - mean) * jax.lax.rsqrt(var + eps) * gam + bet).astype(o_ref.dtype))


# ----------------------------- One-time param prep ---------------------------
def prepare_params(params, *, d_model, num_nodes, num_bands):
    """Hoisted weight prep: transposes, rank-1 fold, shared group-block kron."""
    del num_bands
    dh = d_model // 2
    f32 = jnp.float32
    hi = jax.lax.Precision.HIGHEST

    wc_t = params["comb_w"].astype(f32).T                        # [d, d]
    wc_top, wc_bot = wc_t[:dh], wc_t[dh:]                        # [dh, d]
    node_w = params["node_w"].astype(f32).reshape(1, dh)         # Linear(1, dh) weight^T
    node_b = params["node_b"].astype(f32).reshape(1, dh)

    wn_eff = jnp.dot(node_w, wc_top, precision=hi)               # [1, d]
    b_eff = (jnp.dot(node_b, wc_top, precision=hi)
             + params["comb_b"].astype(f32).reshape(1, d_model))

    npg = _node_group_size(num_nodes, dh)
    eye_nodes = jnp.eye(num_nodes, dtype=f32)
    eye_grp = jnp.eye(npg, dtype=f32)

    return {
        # per-band projection, pre-transposed for x @ W
        "wb_t": jnp.transpose(params["band_w"].astype(f32), (0, 2, 1)),  # [bands, nodes, nodes*dh]
        "bb": params["band_b"].astype(f32)[:, None, :],                  # [bands, 1, nodes*dh]
        # rank-1-folded node-embedding branch (full width, tiny: nodes x nodes*d)
        "wx": jnp.kron(eye_nodes, wn_eff),                               # [nodes, nodes*d]
        "b_full": jnp.tile(b_eff, (1, num_nodes)),                       # [1, nodes*d]
        # SHARED per-node-group combination block (identical for every group)
        "wctx_blk": jnp.kron(eye_grp, wc_bot),                           # [npg*dh, npg*d]
        # LayerNorm reduce / broadcast blocks and tiled affine params
        "red": jnp.kron(eye_grp, jnp.ones((d_model, 1), f32) / d_model), # [npg*d, npg]
        "up": jnp.kron(eye_grp, jnp.ones((1, d_model), f32)),            # [npg, npg*d]
        "gamma_blk": jnp.tile(params["ln_g"].astype(f32).reshape(1, d_model), (1, npg)),
        "beta_blk": jnp.tile(params["ln_b"].astype(f32).reshape(1, d_model), (1, npg)),
    }


# ----------------------------- Wrapper ----------------------------------------
def input_layer_forward(x, prep, *, d_model, num_nodes, num_bands,
                        batch_tile=1024, gelu_approximate=True,
                        out_dtype=jnp.float32):
    """x: [batch, bands, nodes] -> [batch, bands, nodes, d_model].

    batch_tile=1024 keeps total VMEM (~2x output buffers + <0.3 MiB resident
    weights + fused intermediates) well under v7x's 64 MiB; v5e/v6e (128 MiB)
    can sweep batch_tile up to ~2048 with vmem_limit_bytes raised accordingly.
    """
    B, nb, nn_ = x.shape
    assert nb == num_bands and nn_ == num_nodes
    dh = d_model // 2
    f32 = jnp.float32
    x = x.astype(f32)

    # band-major view so every blocked array keeps full last-two dims
    xb = jnp.transpose(x, (1, 0, 2))                         # [bands, B, nodes]

    TB = _pick_batch_tile(B, batch_tile)
    grid_b = pl.cdiv(B, TB)

    nd, ndh = num_nodes * d_model, num_nodes * dh
    npg = _node_group_size(num_nodes, dh)
    n_groups = num_nodes // npg
    gk, gn = npg * dh, npg * d_model

    kernel = functools.partial(
        fused_input_kernel,
        n_groups=n_groups, group_in=gk, group_out=gn,
        eps=1e-5 / d_model,                # sqrt(d_model) scale folded into eps
        approximate=gelu_approximate)

    out_flat = pl.pallas_call(
        kernel,
        out_shape=jax.ShapeDtypeStruct((B, num_bands * nd), out_dtype),
        grid=(grid_b, num_bands),
        in_specs=[
            pl.BlockSpec((None, TB, num_nodes), lambda bt, bd: (bd, bt, 0)),   # xb
            pl.BlockSpec((None, num_nodes, ndh), lambda bt, bd: (bd, 0, 0)),   # wb_t (per band)
            pl.BlockSpec((None, 1, ndh), lambda bt, bd: (bd, 0, 0)),           # bb   (per band)
            _const_spec((num_nodes, nd)),                                      # wx
            _const_spec((gk, gn)),                                             # wctx_blk
            _const_spec((1, nd)),                                              # b_full
            _const_spec((gn, npg)),                                            # red
            _const_spec((npg, gn)),                                            # up
            _const_spec((1, gn)),                                              # gamma_blk
            _const_spec((1, gn)),                                              # beta_blk
        ],
        out_specs=pl.BlockSpec((TB, nd), lambda bt, bd: (bt, bd)),             # lane-dense store
        compiler_params=pltpu.CompilerParams(
            dimension_semantics=("parallel", "parallel"),
            vmem_limit_bytes=48 * 1024 * 1024),
    )(xb, prep["wb_t"], prep["bb"], prep["wx"], prep["wctx_blk"],
      prep["b_full"], prep["red"], prep["up"],
      prep["gamma_blk"], prep["beta_blk"])

    # contiguous (free) reshape: columns inside each band slab are node-major.
    # TODO(synk): nn.Dropout is identity in eval mode; training-mode dropout not applied.
    return out_flat.reshape(B, num_bands, num_nodes, d_model)


# ----------------------------- Reference (pure JAX) ----------------------------
def reference_forward(x, params, *, d_model, num_nodes, num_bands, approximate=False):
    g = lambda v: jax.nn.gelu(v, approximate=approximate)
    B = x.shape[0]
    dh = d_model // 2
    x = x.astype(jnp.float32)
    node_emb = x.reshape(-1, 1) @ params["node_w"].T + params["node_b"]
    node_emb = node_emb.reshape(B, num_bands, num_nodes, dh)
    outs = []
    for i in range(num_bands):
        bv = x[:, i, :]                                                  # [B, nodes]
        ctx = g(bv @ params["band_w"][i].T + params["band_b"][i])
        ctx = ctx.reshape(B, num_nodes, dh)
        combined = jnp.concatenate([node_emb[:, i], ctx], axis=-1)
        final = g(combined @ params["comb_w"].T + params["comb_b"])
        outs.append(final)
    out = jnp.stack(outs, axis=1) * math.sqrt(d_model)
    mean = out.mean(-1, keepdims=True)
    var = ((out - mean) ** 2).mean(-1, keepdims=True)
    return (out - mean) * jax.lax.rsqrt(var + 1e-5) * params["ln_g"] + params["ln_b"]


# ----------------------------- Param init --------------------------------------
def init_params(key, d_model, num_nodes, num_bands):
    dh = d_model // 2
    ks = jax.random.split(key, 6)
    return {
        # nn.Linear(1, d_model // 2)
        "node_w": 0.1 * jax.random.normal(ks[0], (dh, 1), jnp.float32),
        "node_b": 0.1 * jax.random.normal(ks[1], (dh,), jnp.float32),
        # num_bands x nn.Linear(num_nodes, d_model // 2 * num_nodes)
        "band_w": 0.1 * jax.random.normal(ks[2], (num_bands, dh * num_nodes, num_nodes),
                                          jnp.float32),
        "band_b": 0.1 * jax.random.normal(ks[3], (num_bands, dh * num_nodes), jnp.float32),
        # nn.Linear(d_model, d_model)
        "comb_w": 0.1 * jax.random.normal(ks[4], (d_model, d_model), jnp.float32),
        "comb_b": 0.1 * jax.random.normal(ks[5], (d_model,), jnp.float32),
        # nn.LayerNorm(d_model)
        "ln_g": jnp.ones((d_model,), jnp.float32),
        "ln_b": jnp.zeros((d_model,), jnp.float32),
    }


if __name__ == "__main__":
    d_model, num_nodes, num_bands, batch = 32, 32, 5, 2

    key = jax.random.PRNGKey(0)
    k_x, k_p = jax.random.split(key)
    x = jax.random.normal(k_x, (batch, num_bands, num_nodes), jnp.float32)
    params = init_params(k_p, d_model, num_nodes, num_bands)

    prep = prepare_params(params, d_model=d_model, num_nodes=num_nodes,
                          num_bands=num_bands)
    out = input_layer_forward(x, prep, d_model=d_model,
                              num_nodes=num_nodes, num_bands=num_bands)
    out = jax.block_until_ready(out)
    assert out.shape == (batch, num_bands, num_nodes, d_model), out.shape

    # Structural check vs. a reference using the same (tanh) GELU: only MXU
    # default-precision reassociation differences remain -> tight tolerance.
    ref_tanh = reference_forward(x, params, d_model=d_model, num_nodes=num_nodes,
                                 num_bands=num_bands, approximate=True)
    err_tanh = float(jnp.max(jnp.abs(out - ref_tanh)))
    assert jnp.allclose(out, ref_tanh, rtol=5e-4, atol=5e-4), f"max abs err {err_tanh}"

    # Semantic check vs. the exact-erf nn.GELU() reference: tanh-GELU deviates
    # by up to ~1e-3 pre-LayerNorm (amplified slightly by normalization).
    ref_exact = reference_forward(x, params, d_model=d_model, num_nodes=num_nodes,
                                  num_bands=num_bands, approximate=False)
    err_exact = float(jnp.max(jnp.abs(out - ref_exact)))
    assert jnp.allclose(out, ref_exact, rtol=2e-2, atol=2e-2), \
        f"max abs err vs exact-GELU reference {err_exact}"

    print("KERNEL_OK")
</pallas_src>

<mosaic_0001>
module attributes {stable_mosaic.version = 11 : i64} {
  func.func @fused_input_kernel(%arg0: i32, %arg1: i32, %arg2: memref<1x2x32xf32, #tpu.memory_space<vmem>>, %arg3: memref<1x32x512xf32, #tpu.memory_space<vmem>>, %arg4: memref<1x1x512xf32, #tpu.memory_space<vmem>>, %arg5: memref<32x1024xf32, #tpu.memory_space<vmem>>, %arg6: memref<128x256xf32, #tpu.memory_space<vmem>>, %arg7: memref<1x1024xf32, #tpu.memory_space<vmem>>, %arg8: memref<256x8xf32, #tpu.memory_space<vmem>>, %arg9: memref<8x256xf32, #tpu.memory_space<vmem>>, %arg10: memref<1x256xf32, #tpu.memory_space<vmem>>, %arg11: memref<1x256xf32, #tpu.memory_space<vmem>>, %arg12: memref<2x1024xf32, #tpu.memory_space<vmem>>) attributes {dimension_semantics = [#tpu.dimension_semantics<parallel>, #tpu.dimension_semantics<parallel>], iteration_bounds = array<i64: 1, 5>, scalar_prefetch = 0 : i64, scratch_operands = 0 : i64, tpu.core_type = #tpu.core_type<tc>, window_params = [{transform_indices = @transform_0, window_bounds = array<i64: 1, 2, 32>}, {transform_indices = @transform_1, window_bounds = array<i64: 1, 32, 512>}, {transform_indices = @transform_2, window_bounds = array<i64: 1, 1, 512>}, {pipeline_mode = #tpu.pipeline_mode<synchronous>, transform_indices = @transform_3, window_bounds = array<i64: 32, 1024>}, {pipeline_mode = #tpu.pipeline_mode<synchronous>, transform_indices = @transform_4, window_bounds = array<i64: 128, 256>}, {pipeline_mode = #tpu.pipeline_mode<synchronous>, transform_indices = @transform_5, window_bounds = array<i64: 1, 1024>}, {pipeline_mode = #tpu.pipeline_mode<synchronous>, transform_indices = @transform_6, window_bounds = array<i64: 256, 8>}, {pipeline_mode = #tpu.pipeline_mode<synchronous>, transform_indices = @transform_7, window_bounds = array<i64: 8, 256>}, {pipeline_mode = #tpu.pipeline_mode<synchronous>, transform_indices = @transform_8, window_bounds = array<i64: 1, 256>}, {pipeline_mode = #tpu.pipeline_mode<synchronous>, transform_indices = @transform_9, window_bounds = array<i64: 1, 256>}, {transform_indices = @transform_10, window_bounds = array<i64: 2, 1024>}]} {
    %c0 = arith.constant 0 : index
    %c0_0 = arith.constant 0 : index
    %c0_1 = arith.constant 0 : index
    %0 = vector.load %arg2[%c0, %c0_0, %c0_1] : memref<1x2x32xf32, #tpu.memory_space<vmem>>, vector<1x2x32xf32>
    %1 = vector.shape_cast %0 : vector<1x2x32xf32> to vector<2x32xf32>
    %c0_2 = arith.constant 0 : index
    %c0_3 = arith.constant 0 : index
    %c0_4 = arith.constant 0 : index
    %2 = vector.load %arg3[%c0_2, %c0_3, %c0_4] : memref<1x32x512xf32, #tpu.memory_space<vmem>>, vector<1x32x512xf32>
    %3 = vector.shape_cast %2 : vector<1x32x512xf32> to vector<32x512xf32>
    %cst = arith.constant dense<0.000000e+00> : vector<2x512xf32>
    %4 = tpu.matmul %1, %3, %cst {dimension_numbers = #tpu.dot_dimension_numbers<[1], [0], [0], [1], [0, 0, 1, 1], [], []>} : vector<2x32xf32>, vector<32x512xf32>, vector<2x512xf32> -> vector<2x512xf32>
    %c0_5 = arith.constant 0 : index
    %c0_6 = arith.constant 0 : index
    %c0_7 = arith.constant 0 : index
    %5 = vector.load %arg4[%c0_5, %c0_6, %c0_7] : memref<1x1x512xf32, #tpu.memory_space<vmem>>, vector<1x1x512xf32>
    %6 = vector.shape_cast %5 : vector<1x1x512xf32> to vector<1x512xf32>
    %7 = vector.broadcast %6 : vector<1x512xf32> to vector<2x512xf32>
    %8 = arith.addf %4, %7 : vector<2x512xf32>
    %9 = arith.mulf %8, %8 : vector<2x512xf32>
    %10 = arith.mulf %8, %9 : vector<2x512xf32>
    %cst_8 = arith.constant 4.471500e-02 : f32
    %11 = vector.broadcast %cst_8 : f32 to vector<2x512xf32>
    %12 = arith.mulf %11, %10 : vector<2x512xf32>
    %13 = arith.addf %8, %12 : vector<2x512xf32>
    %cst_9 = arith.constant 0.797884583 : f32
    %14 = vector.broadcast %cst_9 : f32 to vector<2x512xf32>
    %15 = arith.mulf %14, %13 : vector<2x512xf32>
    %16 = math.tanh %15 : vector<2x512xf32>
    %cst_10 = arith.constant 1.000000e+00 : f32
    %17 = vector.broadcast %cst_10 : f32 to vector<2x512xf32>
    %18 = arith.addf %17, %16 : vector<2x512xf32>
    %cst_11 = arith.constant 5.000000e-01 : f32
    %19 = vector.broadcast %cst_11 : f32 to vector<2x512xf32>
    %20 = arith.mulf %19, %18 : vector<2x512xf32>
    %21 = arith.mulf %8, %20 : vector<2x512xf32>
    %c0_12 = arith.constant 0 : index
    %c0_13 = arith.constant 0 : index
    %22 = vector.load %arg5[%c0_12, %c0_13] : memref<32x1024xf32, #tpu.memory_space<vmem>>, vector<32x1024xf32>
    %cst_14 = arith.constant dense<0.000000e+00> : vector<2x1024xf32>
    %23 = tpu.matmul %1, %22, %cst_14 {dimension_numbers = #tpu.dot_dimension_numbers<[1], [0], [0], [1], [0, 0, 1, 1], [], []>} : vector<2x32xf32>, vector<32x1024xf32>, vector<2x1024xf32> -> vector<2x1024xf32>
    %c0_15 = arith.constant 0 : index
    %c0_16 = arith.constant 0 : index
    %24 = vector.load %arg7[%c0_15, %c0_16] : memref<1x1024xf32, #tpu.memory_space<vmem>>, vector<1x1024xf32>
    %25 = vector.broadcast %24 : vector<1x1024xf32> to vector<2x1024xf32>
    %26 = arith.addf %23, %25 : vector<2x1024xf32>
    %c0_17 = arith.constant 0 : index
    %c0_18 = arith.constant 0 : index
    %27 = vector.load %arg6[%c0_17, %c0_18] : memref<128x256xf32, #tpu.memory_space<vmem>>, vector<128x256xf32>
    %c0_19 = arith.constant 0 : index
    %c0_20 = arith.constant 0 : index
    %28 = vector.load %arg8[%c0_19, %c0_20] : memref<256x8xf32, #tpu.memory_space<vmem>>, vector<256x8xf32>
    %c0_21 = arith.constant 0 : index
    %c0_22 = arith.constant 0 : index
    %29 = vector.load %arg9[%c0_21, %c0_22] : memref<8x256xf32, #tpu.memory_space<vmem>>, vector<8x256xf32>
    %c0_23 = arith.constant 0 : index
    %c0_24 = arith.constant 0 : index
    %30 = vector.load %arg10[%c0_23, %c0_24] : memref<1x256xf32, #tpu.memory_space<vmem>>, vector<1x256xf32>
    %c0_25 = arith.constant 0 : index
    %c0_26 = arith.constant 0 : index
    %31 = vector.load %arg11[%c0_25, %c0_26] : memref<1x256xf32, #tpu.memory_space<vmem>>, vector<1x256xf32>
    %32 = vector.extract_strided_slice %21 {offsets = [0, 0], sizes = [2, 128], strides = [1, 1]} : vector<2x512xf32> to vector<2x128xf32>
    %33 = vector.extract_strided_slice %26 {offsets = [0, 0], sizes = [2, 256], strides = [1, 1]} : vector<2x1024xf32> to vector<2x256xf32>
    %cst_27 = arith.constant dense<0.000000e+00> : vector<2x256xf32>
    %34 = tpu.matmul %32, %27, %cst_27 {dimension_numbers = #tpu.dot_dimension_numbers<[1], [0], [0], [1], [0, 0, 1, 1], [], []>} : vector<2x128xf32>, vector<128x256xf32>, vector<2x256xf32> -> vector<2x256xf32>
    %35 = arith.addf %33, %34 : vector<2x256xf32>
    %36 = arith.mulf %35, %35 : vector<2x256xf32>
    %37 = arith.mulf %35, %36 : vector<2x256xf32>
    %cst_28 = arith.constant 4.471500e-02 : f32
    %38 = vector.broadcast %cst_28 : f32 to vector<2x256xf32>
    %39 = arith.mulf %38, %37 : vector<2x256xf32>
    %40 = arith.addf %35, %39 : vector<2x256xf32>
    %cst_29 = arith.constant 0.797884583 : f32
    %41 = vector.broadcast %cst_29 : f32 to vector<2x256xf32>
    %42 = arith.mulf %41, %40 : vector<2x256xf32>
    %43 = math.tanh %42 : vector<2x256xf32>
    %cst_30 = arith.constant 1.000000e+00 : f32
    %44 = vector.broadcast %cst_30 : f32 to vector<2x256xf32>
    %45 = arith.addf %44, %43 : vector<2x256xf32>
    %cst_31 = arith.constant 5.000000e-01 : f32
    %46 = vector.broadcast %cst_31 : f32 to vector<2x256xf32>
    %47 = arith.mulf %46, %45 : vector<2x256xf32>
    %48 = arith.mulf %35, %47 : vector<2x256xf32>
    %cst_32 = arith.constant dense<0.000000e+00> : vector<2x8xf32>
    %49 = tpu.matmul %48, %28, %cst_32 {dimension_numbers = #tpu.dot_dimension_numbers<[1], [0], [0], [1], [0, 0, 1, 1], [], []>} : vector<2x256xf32>, vector<256x8xf32>, vector<2x8xf32> -> vector<2x8xf32>
    %50 = arith.mulf %48, %48 : vector<2x256xf32>
    %cst_33 = arith.constant dense<0.000000e+00> : vector<2x8xf32>
    %51 = tpu.matmul %50, %28, %cst_33 {dimension_numbers = #tpu.dot_dimension_numbers<[1], [0], [0], [1], [0, 0, 1, 1], [], []>} : vector<2x256xf32>, vector<256x8xf32>, vector<2x8xf32> -> vector<2x8xf32>
    %cst_34 = arith.constant dense<0.000000e+00> : vector<2x256xf32>
    %52 = tpu.matmul %49, %29, %cst_34 {dimension_numbers = #tpu.dot_dimension_numbers<[1], [0], [0], [1], [0, 0, 1, 1], [], []>} : vector<2x8xf32>, vector<8x256xf32>, vector<2x256xf32> -> vector<2x256xf32>
    %cst_35 = arith.constant dense<0.000000e+00> : vector<2x256xf32>
    %53 = tpu.matmul %51, %29, %cst_35 {dimension_numbers = #tpu.dot_dimension_numbers<[1], [0], [0], [1], [0, 0, 1, 1], [], []>} : vector<2x8xf32>, vector<8x256xf32>, vector<2x256xf32> -> vector<2x256xf32>
    %54 = arith.mulf %52, %52 : vector<2x256xf32>
    %55 = arith.subf %53, %54 : vector<2x256xf32>
    %56 = arith.subf %48, %52 : vector<2x256xf32>
    %cst_36 = arith.constant 3.125000e-07 : f32
    %57 = vector.broadcast %cst_36 : f32 to vector<2x256xf32>
    %58 = arith.addf %55, %57 : vector<2x256xf32>
    %59 = math.rsqrt %58 : vector<2x256xf32>
    %60 = arith.mulf %56, %59 : vector<2x256xf32>
    %61 = vector.broadcast %30 : vector<1x256xf32> to vector<2x256xf32>
    %62 = arith.mulf %60, %61 : vector<2x256xf32>
    %63 = vector.broadcast %31 : vector<1x256xf32> to vector<2x256xf32>
    %64 = arith.addf %62, %63 : vector<2x256xf32>
    %c0_37 = arith.constant 0 : index
    %c0_38 = arith.constant 0 : index
    %65 = vector.load %arg12[%c0_37, %c0_38] : memref<2x1024xf32, #tpu.memory_space<vmem>>, vector<2x256xf32>
    tpu.vector_store %arg12[%c0_37, %c0_38], %64 {strides = array<i32>} : memref<2x1024xf32, #tpu.memory_space<vmem>>, vector<2x256xf32>,
    %66 = vector.extract_strided_slice %21 {offsets = [0, 128], sizes = [2, 128], strides = [1, 1]} : vector<2x512xf32> to vector<2x128xf32>
    %67 = vector.extract_strided_slice %26 {offsets = [0, 256], sizes = [2, 256], strides = [1, 1]} : vector<2x1024xf32> to vector<2x256xf32>
    %cst_39 = arith.constant dense<0.000000e+00> : vector<2x256xf32>
    %68 = tpu.matmul %66, %27, %cst_39 {dimension_numbers = #tpu.dot_dimension_numbers<[1], [0], [0], [1], [0, 0, 1, 1], [], []>} : vector<2x128xf32>, vector<128x256xf32>, vector<2x256xf32> -> vector<2x256xf32>
    %69 = arith.addf %67, %68 : vector<2x256xf32>
    %70 = arith.mulf %69, %69 : vector<2x256xf32>
    %71 = arith.mulf %69, %70 : vector<2x256xf32>
    %cst_40 = arith.constant 4.471500e-02 : f32
    %72 = vector.broadcast %cst_40 : f32 to vector<2x256xf32>
    %73 = arith.mulf %72, %71 : vector<2x256xf32>
    %74 = arith.addf %69, %73 : vector<2x256xf32>
    %cst_41 = arith.constant 0.797884583 : f32
    %75 = vector.broadcast %cst_41 : f32 to vector<2x256xf32>
    %76 = arith.mulf %75, %74 : vector<2x256xf32>
    %77 = math.tanh %76 : vector<2x256xf32>
    %cst_42 = arith.constant 1.000000e+00 : f32
    %78 = vector.broadcast %cst_42 : f32 to vector<2x256xf32>
    %79 = arith.addf %78, %77 : vector<2x256xf32>
    %cst_43 = arith.constant 5.000000e-01 : f32
    %80 = vector.broadcast %cst_43 : f32 to vector<2x256xf32>
    %81 = arith.mulf %80, %79 : vector<2x256xf32>
    %82 = arith.mulf %69, %81 : vector<2x256xf32>
    %cst_44 = arith.constant dense<0.000000e+00> : vector<2x8xf32>
    %83 = tpu.matmul %82, %28, %cst_44 {dimension_numbers = #tpu.dot_dimension_numbers<[1], [0], [0], [1], [0, 0, 1, 1], [], []>} : vector<2x256xf32>, vector<256x8xf32>, vector<2x8xf32> -> vector<2x8xf32>
    %84 = arith.mulf %82, %82 : vector<2x256xf32>
    %cst_45 = arith.constant dense<0.000000e+00> : vector<2x8xf32>
    %85 = tpu.matmul %84, %28, %cst_45 {dimension_numbers = #tpu.dot_dimension_numbers<[1], [0], [0], [1], [0, 0, 1, 1], [], []>} : vector<2x256xf32>, vector<256x8xf32>, vector<2x8xf32> -> vector<2x8xf32>
    %cst_46 = arith.constant dense<0.000000e+00> : vector<2x256xf32>
    %86 = tpu.matmul %83, %29, %cst_46 {dimension_numbers = #tpu.dot_dimension_numbers<[1], [0], [0], [1], [0, 0, 1, 1], [], []>} : vector<2x8xf32>, vector<8x256xf32>, vector<2x256xf32> -> vector<2x256xf32>
    %cst_47 = arith.constant dense<0.000000e+00> : vector<2x256xf32>
    %87 = tpu.matmul %85, %29, %cst_47 {dimension_numbers = #tpu.dot_dimension_numbers<[1], [0], [0], [1], [0, 0, 1, 1], [], []>} : vector<2x8xf32>, vector<8x256xf32>, vector<2x256xf32> -> vector<2x256xf32>
    %88 = arith.mulf %86, %86 : vector<2x256xf32>
    %89 = arith.subf %87, %88 : vector<2x256xf32>
    %90 = arith.subf %82, %86 : vector<2x256xf32>
    %cst_48 = arith.constant 3.125000e-07 : f32
    %91 = vector.broadcast %cst_48 : f32 to vector<2x256xf32>
    %92 = arith.addf %89, %91 : vector<2x256xf32>
    %93 = math.rsqrt %92 : vector<2x256xf32>
    %94 = arith.mulf %90, %93 : vector<2x256xf32>
    %95 = vector.broadcast %30 : vector<1x256xf32> to vector<2x256xf32>
    %96 = arith.mulf %94, %95 : vector<2x256xf32>
    %97 = vector.broadcast %31 : vector<1x256xf32> to vector<2x256xf32>
    %98 = arith.addf %96, %97 : vector<2x256xf32>
    %c0_49 = arith.constant 0 : index
    %c256 = arith.constant 256 : index
    %99 = vector.load %arg12[%c0_49, %c256] : memref<2x1024xf32, #tpu.memory_space<vmem>>, vector<2x256xf32>
    tpu.vector_store %arg12[%c0_49, %c256], %98 {strides = array<i32>} : memref<2x1024xf32, #tpu.memory_space<vmem>>, vector<2x256xf32>,
    %100 = vector.extract_strided_slice %21 {offsets = [0, 256], sizes = [2, 128], strides = [1, 1]} : vector<2x512xf32> to vector<2x128xf32>
    %101 = vector.extract_strided_slice %26 {offsets = [0, 512], sizes = [2, 256], strides = [1, 1]} : vector<2x1024xf32> to vector<2x256xf32>
    %cst_50 = arith.constant dense<0.000000e+00> : vector<2x256xf32>
    %102 = tpu.matmul %100, %27, %cst_50 {dimension_numbers = #tpu.dot_dimension_numbers<[1], [0], [0], [1], [0, 0, 1, 1], [], []>} : vector<2x128xf32>, vector<128x256xf32>, vector<2x256xf32> -> vector<2x256xf32>
    %103 = arith.addf %101, %102 : vector<2x256xf32>
    %104 = arith.mulf %103, %103 : vector<2x256xf32>
    %105 = arith.mulf %103, %104 : vector<2x256xf32>
    %cst_51 = arith.constant 4.471500e-02 : f32
    %106 = vector.broadcast %cst_51 : f32 to vector<2x256xf32>
    %107 = arith.mulf %106, %105 : vector<2x256xf32>
    %108 = arith.addf %103, %107 : vector<2x256xf32>
    %cst_52 = arith.constant 0.797884583 : f32
    %109 = vector.broadcast %cst_52 : f32 to vector<2x256xf32>
    %110 = arith.mulf %109, %108 : vector<2x256xf32>
    %111 = math.tanh %110 : vector<2x256xf32>
    %cst_53 = arith.constant 1.000000e+00 : f32
    %112 = vector.broadcast %cst_53 : f32 to vector<2x256xf32>
    %113 = arith.addf %112, %111 : vector<2x256xf32>
    %cst_54 = arith.constant 5.000000e-01 : f32
    %114 = vector.broadcast %cst_54 : f32 to vector<2x256xf32>
    %115 = arith.mulf %114, %113 : vector<2x256xf32>
    %116 = arith.mulf %103, %115 : vector<2x256xf32>
    %cst_55 = arith.constant dense<0.000000e+00> : vector<2x8xf32>
    %117 = tpu.matmul %116, %28, %cst_55 {dimension_numbers = #tpu.dot_dimension_numbers<[1], [0], [0], [1], [0, 0, 1, 1], [], []>} : vector<2x256xf32>, vector<256x8xf32>, vector<2x8xf32> -> vector<2x8xf32>
    %118 = arith.mulf %116, %116 : vector<2x256xf32>
    %cst_56 = arith.constant dense<0.000000e+00> : vector<2x8xf32>
    %119 = tpu.matmul %118, %28, %cst_56 {dimension_numbers = #tpu.dot_dimension_numbers<[1], [0], [0], [1], [0, 0, 1, 1], [], []>} : vector<2x256xf32>, vector<256x8xf32>, vector<2x8xf32> -> vector<2x8xf32>
    %cst_57 = arith.constant dense<0.000000e+00> : vector<2x256xf32>
    %120 = tpu.matmul %117, %29, %cst_57 {dimension_numbers = #tpu.dot_dimension_numbers<[1], [0], [0], [1], [0, 0, 1, 1], [], []>} : vector<2x8xf32>, vector<8x256xf32>, vector<2x256xf32> -> vector<2x256xf32>
    %cst_58 = arith.constant dense<0.000000e+00> : vector<2x256xf32>
    %121 = tpu.matmul %119, %29, %cst_58 {dimension_numbers = #tpu.dot_dimension_numbers<[1], [0], [0], [1], [0, 0, 1, 1], [], []>} : vector<2x8xf32>, vector<8x256xf32>, vector<2x256xf32> -> vector<2x256xf32>
    %122 = arith.mulf %120, %120 : vector<2x256xf32>
    %123 = arith.subf %121, %122 : vector<2x256xf32>
    %124 = arith.subf %116, %120 : vector<2x256xf32>
    %cst_59 = arith.constant 3.125000e-07 : f32
    %125 = vector.broadcast %cst_59 : f32 to vector<2x256xf32>
    %126 = arith.addf %123, %125 : vector<2x256xf32>
    %127 = math.rsqrt %126 : vector<2x256xf32>
    %128 = arith.mulf %124, %127 : vector<2x256xf32>
    %129 = vector.broadcast %30 : vector<1x256xf32> to vector<2x256xf32>
    %130 = arith.mulf %128, %129 : vector<2x256xf32>
    %131 = vector.broadcast %31 : vector<1x256xf32> to vector<2x256xf32>
    %132 = arith.addf %130, %131 : vector<2x256xf32>
    %c0_60 = arith.constant 0 : index
    %c512 = arith.constant 512 : index
    %133 = vector.load %arg12[%c0_60, %c512] : memref<2x1024xf32, #tpu.memory_space<vmem>>, vector<2x256xf32>
    tpu.vector_store %arg12[%c0_60, %c512], %132 {strides = array<i32>} : memref<2x1024xf32, #tpu.memory_space<vmem>>, vector<2x256xf32>,
    %134 = vector.extract_strided_slice %21 {offsets = [0, 384], sizes = [2, 128], strides = [1, 1]} : vector<2x512xf32> to vector<2x128xf32>
    %135 = vector.extract_strided_slice %26 {offsets = [0, 768], sizes = [2, 256], strides = [1, 1]} : vector<2x1024xf32> to vector<2x256xf32>
    %cst_61 = arith.constant dense<0.000000e+00> : vector<2x256xf32>
    %136 = tpu.matmul %134, %27, %cst_61 {dimension_numbers = #tpu.dot_dimension_numbers<[1], [0], [0], [1], [0, 0, 1, 1], [], []>} : vector<2x128xf32>, vector<128x256xf32>, vector<2x256xf32> -> vector<2x256xf32>
    %137 = arith.addf %135, %136 : vector<2x256xf32>
    %138 = arith.mulf %137, %137 : vector<2x256xf32>
    %139 = arith.mulf %137, %138 : vector<2x256xf32>
    %cst_62 = arith.constant 4.471500e-02 : f32
    %140 = vector.broadcast %cst_62 : f32 to vector<2x256xf32>
    %141 = arith.mulf %140, %139 : vector<2x256xf32>
    %142 = arith.addf %137, %141 : vector<2x256xf32>
    %cst_63 = arith.constant 0.797884583 : f32
    %143 = vector.broadcast %cst_63 : f32 to vector<2x256xf32>
    %144 = arith.mulf %143, %142 : vector<2x256xf32>
    %145 = math.tanh %144 : vector<2x256xf32>
    %cst_64 = arith.constant 1.000000e+00 : f32
    %146 = vector.broadcast %cst_64 : f32 to vector<2x256xf32>
    %147 = arith.addf %146, %145 : vector<2x256xf32>
    %cst_65 = arith.constant 5.000000e-01 : f32
    %148 = vector.broadcast %cst_65 : f32 to vector<2x256xf32>
    %149 = arith.mulf %148, %147 : vector<2x256xf32>
    %150 = arith.mulf %137, %149 : vector<2x256xf32>
    %cst_66 = arith.constant dense<0.000000e+00> : vector<2x8xf32>
    %151 = tpu.matmul %150, %28, %cst_66 {dimension_numbers = #tpu.dot_dimension_numbers<[1], [0], [0], [1], [0, 0, 1, 1], [], []>} : vector<2x256xf32>, vector<256x8xf32>, vector<2x8xf32> -> vector<2x8xf32>
    %152 = arith.mulf %150, %150 : vector<2x256xf32>
    %cst_67 = arith.constant dense<0.000000e+00> : vector<2x8xf32>
    %153 = tpu.matmul %152, %28, %cst_67 {dimension_numbers = #tpu.dot_dimension_numbers<[1], [0], [0], [1], [0, 0, 1, 1], [], []>} : vector<2x256xf32>, vector<256x8xf32>, vector<2x8xf32> -> vector<2x8xf32>
    %cst_68 = arith.constant dense<0.000000e+00> : vector<2x256xf32>
    %154 = tpu.matmul %151, %29, %cst_68 {dimension_numbers = #tpu.dot_dimension_numbers<[1], [0], [0], [1], [0, 0, 1, 1], [], []>} : vector<2x8xf32>, vector<8x256xf32>, vector<2x256xf32> -> vector<2x256xf32>
    %cst_69 = arith.constant dense<0.000000e+00> : vector<2x256xf32>
    %155 = tpu.matmul %153, %29, %cst_69 {dimension_numbers = #tpu.dot_dimension_numbers<[1], [0], [0], [1], [0, 0, 1, 1], [], []>} : vector<2x8xf32>, vector<8x256xf32>, vector<2x256xf32> -> vector<2x256xf32>
    %156 = arith.mulf %154, %154 : vector<2x256xf32>
    %157 = arith.subf %155, %156 : vector<2x256xf32>
    %158 = arith.subf %150, %154 : vector<2x256xf32>
    %cst_70 = arith.constant 3.125000e-07 : f32
    %159 = vector.broadcast %cst_70 : f32 to vector<2x256xf32>
    %160 = arith.addf %157, %159 : vector<2x256xf32>
    %161 = math.rsqrt %160 : vector<2x256xf32>
    %162 = arith.mulf %158, %161 : vector<2x256xf32>
    %163 = vector.broadcast %30 : vector<1x256xf32> to vector<2x256xf32>
    %164 = arith.mulf %162, %163 : vector<2x256xf32>
    %165 = vector.broadcast %31 : vector<1x256xf32> to vector<2x256xf32>
    %166 = arith.addf %164, %165 : vector<2x256xf32>
    %c0_71 = arith.constant 0 : index
    %c768 = arith.constant 768 : index
    %167 = vector.load %arg12[%c0_71, %c768] : memref<2x1024xf32, #tpu.memory_space<vmem>>, vector<2x256xf32>
    tpu.vector_store %arg12[%c0_71, %c768], %166 {strides = array<i32>} : memref<2x1024xf32, #tpu.memory_space<vmem>>, vector<2x256xf32>,
    return
  }
  func.func @transform_0(%arg0: i32, %arg1: i32) -> (i32, i32, i32) {
    %c0_i32 = arith.constant 0 : i32
    %c0_i32_0 = arith.constant 0 : i32
    return %arg1, %arg0, %c0_i32 : i32, i32, i32
  }
  func.func @transform_1(%arg0: i32, %arg1: i32) -> (i32, i32, i32) {
    %c0_i32 = arith.constant 0 : i32
    %c0_i32_0 = arith.constant 0 : i32
    %c0_i32_1 = arith.constant 0 : i32
    return %arg1, %c0_i32, %c0_i32_0 : i32, i32, i32
  }
  func.func @transform_2(%arg0: i32, %arg1: i32) -> (i32, i32, i32) {
    %c0_i32 = arith.constant 0 : i32
    %c0_i32_0 = arith.constant 0 : i32
    %c0_i32_1 = arith.constant 0 : i32
    return %arg1, %c0_i32, %c0_i32_0 : i32, i32, i32
  }
  func.func @transform_3(%arg0: i32, %arg1: i32) -> (i32, i32) {
    %c0_i32 = arith.constant 0 : i32
    %c0_i32_0 = arith.constant 0 : i32
    %c0_i32_1 = arith.constant 0 : i32
    return %c0_i32, %c0_i32_0 : i32, i32
  }
  func.func @transform_4(%arg0: i32, %arg1: i32) -> (i32, i32) {
    %c0_i32 = arith.constant 0 : i32
    %c0_i32_0 = arith.constant 0 : i32
    %c0_i32_1 = arith.constant 0 : i32
    return %c0_i32, %c0_i32_0 : i32, i32
  }
  func.func @transform_5(%arg0: i32, %arg1: i32) -> (i32, i32) {
    %c0_i32 = arith.constant 0 : i32
    %c0_i32_0 = arith.constant 0 : i32
    %c0_i32_1 = arith.constant 0 : i32
    return %c0_i32, %c0_i32_0 : i32, i32
  }
  func.func @transform_6(%arg0: i32, %arg1: i32) -> (i32, i32) {
    %c0_i32 = arith.constant 0 : i32
    %c0_i32_0 = arith.constant 0 : i32
    %c0_i32_1 = arith.constant 0 : i32
    return %c0_i32, %c0_i32_0 : i32, i32
  }
  func.func @transform_7(%arg0: i32, %arg1: i32) -> (i32, i32) {
    %c0_i32 = arith.constant 0 : i32
    %c0_i32_0 = arith.constant 0 : i32
    %c0_i32_1 = arith.constant 0 : i32
    return %c0_i32, %c0_i32_0 : i32, i32
  }
  func.func @transform_8(%arg0: i32, %arg1: i32) -> (i32, i32) {
    %c0_i32 = arith.constant 0 : i32
    %c0_i32_0 = arith.constant 0 : i32
    %c0_i32_1 = arith.constant 0 : i32
    return %c0_i32, %c0_i32_0 : i32, i32
  }
  func.func @transform_9(%arg0: i32, %arg1: i32) -> (i32, i32) {
    %c0_i32 = arith.constant 0 : i32
    %c0_i32_0 = arith.constant 0 : i32
    %c0_i32_1 = arith.constant 0 : i32
    return %c0_i32, %c0_i32_0 : i32, i32
  }
  func.func @transform_10(%arg0: i32, %arg1: i32) -> (i32, i32) {
    %c0_i32 = arith.constant 0 : i32
    return %arg0, %arg1 : i32, i32
  }
}

</mosaic_0001>

<bundles_post_ra>
// kernel: tpu_custom_call.1
= control target key start
LH: loop header
LB: loop body
LE: loop exit
PB: predicated region body
PF: predicated region fallthrough
CT: control target
= control target key end

     0   :  { %s5068_s0 = inlined_call_operand.hbm [shape: f32[5,2,32], index: 0, kind: input, shape index: {}]   ;;  %s5069_s1 = inlined_call_operand.hbm [shape: f32[5,32,512], index: 1, kind: input, shape index: {}]   ;;  %s5070_s2 = inlined_call_operand.vmem [shape: f32[5,1,512], index: 2, kind: input, shape index: {}]   ;;  %s5071_s3 = inlined_call_operand.vmem [shape: f32[32,1024], index: 3, kind: input, shape index: {}]   ;;  %s5072_s4 = inlined_call_operand.hbm [shape: f32[128,256], index: 4, kind: input, shape index: {}]   ;;  %s5073_s5 = inlined_call_operand.hbm [shape: f32[1,1024], index: 5, kind: input, shape index: {}]   ;;  %s5074_s6 = inlined_call_operand.vmem [shape: f32[256,8], index: 6, kind: input, shape index: {}]   ;;  %s5075_s7 = inlined_call_operand.hbm [shape: f32[8,256], index: 7, kind: input, shape index: {}]   ;;  %s5076_s8 = inlined_call_operand.vmem [shape: f32[1,256], index: 8, kind: input, shape index: {}]   ;;  %s5077_s9 = inlined_call_operand.vmem [shape: f32[1,256], index: 9, kind: input, shape index: {}]   ;;  %s5078_s10 = inlined_call_operand.hbm [shape: f32[2,5120], index: 10, kind: output, shape index: {}]  }
   0x1   :  { %5151 = sst [smem:[#allocation56_spill]] %s5068_s0 }
   0x2   :  { %5152 = sst [smem:[#allocation57_spill]] %s5072_s4 }
   0x3   :  { %5153 = sst [smem:[#allocation58_spill]] %s5073_s5 }
   0x4   :  { %5154 = sst [smem:[#allocation59_spill]] %s5075_s7 }
   0x5   :  { %15 = vsyncpa [#allocation3], 0 }
   0x6   :  { %17 = vsyncpa [#allocation3 + $0x1], 0 }
   0x7   :  { %18 = vsyncpa [#allocation6], 0 }
   0x8   :  { %20 = vsyncpa [#allocation6 + $0x1], 0 }
   0x9   :  { %21 = vsyncpa [#allocation9], 0 }
   0xa   :  { %22 = vsyncpa [#allocation4], 0 }
   0xb   :  { %24 = vsyncpa [#allocation4 + $0x1], 0  ;;  %s3786_s13 = smov 0   ;;  %s3788_s14 = smov 0  }
   0xc   :  { %s3790_s15 = smov 0   ;;  %s3792_s16 = smov 0  }
   0xd   :  { %s3794_s17 = smov 0   ;;  %s3796_s18 = smov 0  }
   0xe LB: > { %5155 = sst [smem:[#allocation17_spill]] %s3698_s13  ;;  %s3817_s19 = sadd.s32 4294967295, %s3718_s18   ;;  %s3718_s18 = sphi %s3796_s18, %s30_s18   ;;  %s3714_s17 = sphi %s3794_s17, %s5295_s17   ;;  %s3710_s16 = sphi %s3792_s16, %s5294_s16   ;;  %s3706_s15 = sphi %s3790_s15, %s5293_s15   ;;  %s3702_s14 = sphi %s3788_s14, %s5297_s14   ;;  %s3698_s13 = sphi %s3786_s13, %s5296_s13  }
   0xf   : > { %5156 = sst [smem:[#allocation18_spill]] %s3706_s15  ;;  %s2958_s20 = sadd.s32 4294967294, %s3718_s18  }
  0x10   : > { %5157 = sst [smem:[#allocation19_spill]] %s3714_s17  ;;  %p64_p0 = scmp.ne.s32.totalorder %s3702_s14, %s3698_s13 }
  0x11   : > { %p5079_p1 = scmp.eq.s32.totalorder %s3817_s19, 0  ;;  %p295_p3 = scmp.eq.s32.totalorder %s2958_s20, 4 }
  0x12   : > { %p2959_p5 = scmp.ge.s32.totalorder %s3718_s18, 1  ;;  %p302_p7 = scmp.lt.s32.totalorder %s3718_s18, 6 }
  0x13   : > { %p3826_p4 = por %p5079_p1, %p64_p0  ;;  %p3831_p6 = por %p295_p3, %p64_p0 }
  0x14   : > { %p3836_p8 = pnand %p2959_p5, %p302_p7  ;;  %s3720_s24 = smov [#allocation7]  }
  0x15   : > { %s5158_s21 = scalar_select %p3826_p4, 1, 0 }
  0x16   : > { %s5159_s22 = scalar_select %p3831_p6, 1, 0 }
  0x17   : > { %s317_s25 = sshll.u32 %s3720_s24, 4  ;;  %p3300_p9 = pneg %p3836_p8  ;;  %s318_s25 = int_to_ptr.vmem [resolvable:$true] %s317_s25 }
  0x18   : > { %5160 = sst [smem:[#allocation20_spill]] %s5159_s22  ;;  %s3721_s27 = smov [#allocation8]  }
  0x19   : > { %p3844_p10 = pnand %p3300_p9, %p5079_p1  ;;  %s331_s28 = sshll.u32 %s3721_s27, 4  ;;  %s332_s28 = int_to_ptr.vmem [resolvable:$true] %s331_s28 }
  0x1a   : > { %s3722_s29 = smov [#allocation10]   ;;  %s3503_s11 = scalar_lea.vmem %s318_s25, 4096 }
  0x1b   : > { %s345_s30 = sshll.u32 %s3722_s29, 4  ;;  %p3494_p11 = pneg %p3844_p10  ;;  %s346_s30 = int_to_ptr.vmem [resolvable:$true] %s345_s30 }
  0x1c   : > { %p3504_p12 = scmp.ne.s32.totalorder %s318_s25, %s3503_s11  ;;  %p3511_p3 = scmp.lt.s32.totalorder %s318_s25, %s318_s25 }
  0x1d   : > { %p3512_p5 = scmp.lt.s32.totalorder %s3503_s11, %s3503_s11 }
  0x1e   : > { %p3506_p13 = pnand %p3504_p12, %p3494_p11 }
  0x1f   : > { %p3513_p7 = por %p3512_p5, %p3511_p3 }
  0x20   : > { %p3507_p0 = pneg %p3506_p13 }
  0x22   : > { %p3514_p9 = pnand %p3513_p7, %p3507_p0 }
  0x24   : > { %3517 = shalt.err (!%p3514_p9)
}
  0x25   : > { %s3723_s12 = smov 256   ;;  %s3724_s20 = smov 16  }
  0x26   : > { %s5163_s4 = sld [smem:[#allocation57_spill]]  ;;  %s3529_s29 = scalar_lea.vmem %s332_s28, 128 }
  0x27   : > { %p3530_p1 = scmp.ne.s32.totalorder %s332_s28, %s3529_s29  ;;  %p3537_p2 = scmp.lt.s32.totalorder %s332_s28, %s332_s28 }
  0x28   : > { %p3538_p6 = scmp.lt.s32.totalorder %s3529_s29, %s3529_s29 }
  0x29   : > { %p3532_p12 = pnand %p3530_p1, %p3494_p11 }
  0x2a   : > { %p3539_p3 = por %p3538_p6, %p3537_p2 }
  0x2b   : > { %p3533_p13 = pneg %p3532_p12 }
  0x2c   : > { %3303 = dma.hbm_to_vmem [thread:$0]  (!%p3844_p10), %s5163_s4, 4096, %s318_s25, [#allocation6], %s3723_s12, %s3723_s12, %s3724_s20  }
  0x2d   : > { %p3540_p0 = pnand %p3539_p3, %p3533_p13 }
  0x2f   : > { %3543 = shalt.err (!%p3540_p0)
}
  0x30   : > { %s5164_s5 = sld [smem:[#allocation58_spill]]  ;;  %s3555_s25 = scalar_lea.vmem %s346_s30, 256 }
  0x31   : > { %p3556_p5 = scmp.ne.s32.totalorder %s346_s30, %s3555_s25  ;;  %p3563_p9 = scmp.lt.s32.totalorder %s346_s30, %s346_s30 }
  0x32   : > { %p3564_p12 = scmp.lt.s32.totalorder %s3555_s25, %s3555_s25 }
  0x33   : > { %p3558_p7 = pnand %p3556_p5, %p3494_p11 }
  0x34   : > { %p3565_p4 = por %p3564_p12, %p3563_p9 }
  0x35   : > { %p3559_p1 = pneg %p3558_p7 }
  0x36   : > { %3306 = dma.hbm_to_vmem [thread:$0]  (!%p3844_p10), %s5164_s5, 128, %s332_s28, [#allocation9]  }
  0x37   : > { %p3566_p2 = pnand %p3565_p4, %p3559_p1 }
  0x39   : > { %3569 = shalt.err (!%p3566_p2)
}
  0x3a   : > { %s5165_s7 = sld [smem:[#allocation59_spill]]  ;;  %s51_s22 = sadd.s32 1, %s3706_s15 }
  0x3b   : > { %s39_s28 = sadd.s32 1, %s3714_s17  ;;  %p58_p4 = scmp.ne.s32.totalorder %s3706_s15, %s3702_s14 }
  0x3c   : > { %p40_p6 = scmp.ge.s32.totalorder %s39_s28, 5  ;;  %p59_p11 = scmp.eq.s32.totalorder %s3718_s18, 0 }
  0x3d   : > { %p5166_p13 = scmp.eq.s32.totalorder %s3817_s19, 4  ;;  %p3324_p0 = scmp.lt.s32.totalorder %s3718_s18, 5 }
  0x3e   : > { %s5299_s28 = smov (%p40_p6, %s39_s28), 0  ;;  %p60_p5 = por %p59_p11, %p58_p4 }
  0x3f   : > { %p3881_p3 = por %p5166_p13, %p58_p4  ;;  %5168 = sst [smem:[#allocation21_spill]] %s5299_s28 }
  0x40   : > { %3309 = dma.hbm_to_vmem [thread:$0]  (!%p3844_p10), %s5165_s7, 256, %s346_s30, [#allocation9]  }
  0x41   : > { %s3889_s24 = sand.u32 1, %s3706_s15   ;;  %s46_s30 = ssub.s32 %s3714_s17, %s5299_s28 }
  0x42   : > { %p49_p10 = scmp.eq.s32.totalorder %s46_s30, 0  ;;  %s2964_s27 = sshll.u32 %s3889_s24, 1 }
  0x43   : > { %s2965_s29 = sshll.u32 %s3714_s17, 5  ;;  %s5170_s0 = sld [smem:[#allocation56_spill]] }
  0x44   : > { %s3896_s11 = scalar_select %p49_p10, %s3706_s15, %s51_s22  }
  0x45   : > { %s366_s4 = scalar_lea.vmem [#allocation2], %s2964_s27  ;;  %p3903_p7 = pnand %p3324_p0, %p60_p5 }
  0x46   : > { %5169 = sst [smem:[#allocation22_spill]] %s3896_s11  ;;  %s374_s5 = sshll.u32 %s366_s4, 4  ;;  %s375_s5 = int_to_ptr.vmem [resolvable:$true] %s374_s5 }
  0x47   : > { %s2966_s28 = sshll.u32 %s3889_s24, 7  ;;  %s3000_s30 = sshll.u32 %s3714_s17, 11 }
  0x48   : > { %s363_s13 = scalar_lea.sflag [#allocation3], %s3889_s24  ;;  %p3572_p1 = pneg %p3903_p7 }
  0x49   : > { %s372_s20 = scalar_lea.hbm %s5170_s0, %s2965_s29  ;;  %s3583_s22 = scalar_lea.vmem %s375_s5, 32 }
  0x4a   : > { %p3584_p9 = scmp.ne.s32.totalorder %s375_s5, %s3583_s22  ;;  %s3725_s4 = smov [#allocation2]  }
  0x4b   : > { %s3588_s27 = sshll.u32 %s3725_s4, 4  ;;  %s3589_s27 = int_to_ptr.vmem [resolvable:$false] %s3588_s27 }
  0x4c   : > { %p3586_p12 = pnand %p3584_p9, %p3572_p1  ;;  %s3590_s29 = scalar_lea.vmem %s3589_s27, 64 }
  0x4d   : > { %p3591_p4 = scmp.lt.s32.totalorder %s375_s5, %s3589_s27  ;;  %p3592_p6 = scmp.lt.s32.totalorder %s3590_s29, %s3583_s22 }
  0x4e   : > { %p3587_p2 = pneg %p3586_p12 }
  0x4f   : > { %p3593_p11 = por %p3592_p6, %p3591_p4 }
  0x51   : > { %p3594_p13 = pnand %p3593_p11, %p3587_p2 }
  0x53   : > { %3597 = shalt.err (!%p3594_p13)
}
  0x54   : > { %3313 = dma.hbm_to_vmem [thread:$0]  (!%p3903_p7), %s372_s20, 32, %s375_s5, %s363_s13  }
  0x55   : > { %s385_s24 = scalar_lea.vmem [#allocation5], %s2966_s28  ;;  %s381_s12 = sand.u32 1, %s3718_s18  }
  0x56   : > { %s392_s25 = sshll.u32 %s385_s24, 4  ;;  %s391_s4 = scalar_lea.hbm %s5069_s1, %s3000_s30  ;;  %s393_s25 = int_to_ptr.vmem [resolvable:$true] %s392_s25 }
  0x57   : > { %s382_s11 = scalar_lea.sflag [#allocation6], %s381_s12  ;;  %s3611_s15 = scalar_lea.vmem %s393_s25, 2048 }
  0x58   : > { %p3612_p0 = scmp.ne.s32.totalorder %s393_s25, %s3611_s15  ;;  %s3726_s22 = smov [#allocation5]  }
  0x59   : > { %s3616_s27 = sshll.u32 %s3726_s22, 4  ;;  %s3617_s27 = int_to_ptr.vmem [resolvable:$false] %s3616_s27 }
  0x5a   : > { %p3614_p5 = pnand %p3612_p0, %p3572_p1  ;;  %s3618_s29 = scalar_lea.vmem %s3617_s27, 4096 }
  0x5b   : > { %p3619_p9 = scmp.lt.s32.totalorder %s393_s25, %s3617_s27  ;;  %p3620_p12 = scmp.lt.s32.totalorder %s3618_s29, %s3611_s15 }
  0x5c   : > { %p3615_p10 = pneg %p3614_p5 }
  0x5d   : > { %p3621_p2 = por %p3620_p12, %p3619_p9 }
  0x5f   : > { %p3622_p4 = pnand %p3621_p2, %p3615_p10 }
  0x61   : > { %3625 = shalt.err (!%p3622_p4)
}
  0x62   : > { %s3727_s5 = smov 512   ;;  %s3728_s0 = smov 32  }
  0x63   : > { %3316 = dma.hbm_to_vmem [thread:$0]  (!%p3903_p7), %s391_s4, 2048, %s393_s25, %s382_s11, %s3727_s5, %s3727_s5, %s3728_s0  }
  0x64   : > { %411 = sbr.rel (%p3836_p8) target bundleno = 2400 (0x960), region = 60 }
  0x69   : > { %s3929_s13 = sand.u32 1, %s3702_s14   ;;  %p5172_p1 = scmp.ne.s32.totalorder %s5158_s21, 0 }
  0x6a   : > { %s2970_s17 = sshll.u32 %s3929_s13, 1  ;;  %s414_s28 = scalar_lea.sflag [#allocation3], %s3929_s13 }
  0x6b   : > { %s417_s15 = scalar_lea.vmem [#allocation2], %s2970_s17 }
  0x6c   : > { %3677 = dma.done.wait (%p5172_p1), %s414_s28, 32  }
  0x6d   : > { %3679 = vsyncadd (%p5172_p1), %s414_s28, 4294967264  ;;  %s422_s7 = sand.u32 1, %s3817_s19   ;;  %s2971_s23 = sshll.u32 %s3929_s13, 7 }
  0x6e   : > { %s423_s11 = scalar_lea.sflag [#allocation6], %s422_s7  ;;  %s3939_s20 = scalar_lea.vmem [#allocation5], %s2971_s23 }
  0x6f   : > { %3681 = dma.done.wait (%p5172_p1), %s423_s11, 2048  }
  0x70   : > { %3683 = vsyncadd (%p5172_p1), %s423_s11, 4294965248  ;;  %p5173_p8 = scmp.eq.s32.totalorder %s3817_s19, 0 }
  0x72   : > { %3685 = dma.done.wait (%p5173_p8), [#allocation6], 4096   ;;  %p5174_p7 = pmov %p5173_p8 }
  0x74   : > { %3687 = vsyncadd (%p5174_p7), [#allocation6], 4294963200  ;;  %p5175_p6 = pmov %p5174_p7 }
  0x76   : > { %3689 = dma.done.wait (%p5175_p6), [#allocation9], 384   ;;  %p5176_p11 = pmov %p5175_p6 }
  0x77   : > { %v5086_v0 = vmov 0.0   ;;  %v503_v1 = vld [vmem:[%s3939_s20 + $0x68] sm:$0xff]  ;;  %v502_v2 = vld [vmem:[%s3939_s20 + $0x60] sm:$0xff]  ;;  %v3963_v9 = vld [vmem:[%s417_s15] sm:$0x3]  ;;  %vm528_vm0 = vcmask 261120  }
  0x78   : > { %3691 = vsyncadd (%p5176_p11), [#allocation9], 4294966912  ;;  %596 = vmatprep.mubr.f32.mxu0 %v5086_v0  ;;  %667 = vmatprep.mubr.f32.mxu1 %v5086_v0  ;;  %v499_v3 = vld [vmem:[%s3939_s20 + $0x48] sm:$0xff]  ;;  %v498_v4 = vld [vmem:[%s3939_s20 + $0x40] sm:$0xff]  ;;  %p484_p13 = scmp.lt.s32.totalorder %s3710_s16, 4  ;;  %vm1369_vm1 = vcmask 64512  }
  0x79   : > { %556 = vmatprep.subr.mxu0 %v503_v1  ;;  %v495_v5 = vld [vmem:[%s3939_s20 + $0x28] sm:$0xff]  ;;  %v494_v6 = vld [vmem:[%s3939_s20 + $0x20] sm:$0xff]  ;;  %v4022_v26 = vld [vmem:[#allocation7 + $0xf8] sm:$0xff]  ;;  %s3001_s11 = sshll.u32 %s3710_s16, 8  ;;  %s2796_s24 = scalar_lea.sflag [#allocation4], %s3929_s13 }
  0x7a   : > { %557 = vmatpush1.msra.mxu0 %v502_v2  ;;  %v491_v7 = vld [vmem:[%s3939_s20 + $0x8] sm:$0xff]  ;;  %v490_v8 = vld [vmem:[%s3939_s20] sm:$0xff]  ;;  %v4025_v27 = vld [vmem:[#allocation7 + $0xf0] sm:$0xff]  ;;  %s485_s25 = scalar_select %p484_p13, %s3710_s16, 4 }
  0x7b   : > { %558 = vmatprep.subr.mxu0 %v499_v3  ;;  %v735_v10 = vld [vmem:[%s5071_s3 + $0xc8] sm:$0xff]  ;;  %v734_v11 = vld [vmem:[%s5071_s3 + $0xc0] sm:$0xff]  ;;  %v4037_v31 = vld [vmem:[#allocation7 + $0xd0] sm:$0xff]  ;;  %s2810_s30 = scalar_lea.hbm %s5078_s10, %s3001_s11 }
  0x7c   : > { %559 = vmatpush1.msra.mxu0 %v498_v4  ;;  %v727_v12 = vld [vmem:[%s5071_s3 + $0x88] sm:$0xff]  ;;  %v726_v13 = vld [vmem:[%s5071_s3 + $0x80] sm:$0xff]  ;;  %v4049_v35 = vld [vmem:[#allocation7 + $0xb0] sm:$0xff]  ;;  %s2976_s12 = sshll.u32 %s485_s25, 2 }
  0x7d   : > { %560 = vmatprep.subr.mxu0 %v495_v5  ;;  %v719_v14 = vld [vmem:[%s5071_s3 + $0x48] sm:$0xff]  ;;  %v718_v15 = vld [vmem:[%s5071_s3 + $0x40] sm:$0xff]  ;;  %5177 = vst [vmem:[#allocation23_spill] sm:$0xff] %v4049_v35  ;;  %v4061_v39 = vld [vmem:[#allocation7 + $0x90] sm:$0xff]  ;;  %s487_s27 = scalar_lea.vmem %s5070_s2, %s2976_s12  ;;  %s2975_s12 = sshll.u32 %s3929_s13, 4 }
  0x7e   : > { %561 = vmatpush1.msra.mxu0 %v494_v6  ;;  %v711_v16 = vld [vmem:[%s5071_s3 + $0x8] sm:$0xff]  ;;  %v710_v17 = vld [vmem:[%s5071_s3] sm:$0xff]  ;;  %5181 = vst [vmem:[#allocation27_spill] sm:$0xff] %v4061_v39  ;;  %v4071_v43 = vld [vmem:[#allocation7 + $0x70] sm:$0xff]  ;;  %s4614_s4 = scalar_lea.vmem [#allocation11], %s2975_s12  ;;  %s3730_s12 = smov [#allocation11]  }
  0x7f   : > { %562 = vmatprep.subr.mxu0 %v491_v7  ;;  %v739_v18 = vld [vmem:[%s5071_s3 + $0xe8] sm:$0xff]  ;;  %v738_v19 = vld [vmem:[%s5071_s3 + $0xe0] sm:$0xff]  ;;  %5185 = vst [vmem:[#allocation31_spill] sm:$0xff] %v4071_v43  ;;  %v4083_v47 = vld [vmem:[#allocation7 + $0x50] sm:$0xff]  ;;  %s2812_s19 = sshll.u32 %s4614_s4, 4  ;;  %s3630_s16 = sshll.u32 %s3730_s12, 4  ;;  %s2813_s19 = int_to_ptr.vmem [resolvable:$true] %s2812_s19  ;;  %s3631_s16 = int_to_ptr.vmem [resolvable:$false] %s3630_s16 }
  0x80   : > { %563 = vmatpush1.msra.mxu0 %v490_v8  ;;  %v731_v20 = vld [vmem:[%s5071_s3 + $0xa8] sm:$0xff]  ;;  %v730_v21 = vld [vmem:[%s5071_s3 + $0xa0] sm:$0xff]  ;;  %5189 = vst [vmem:[#allocation35_spill] sm:$0xff] %v4083_v47  ;;  %v4095_v51 = vld [vmem:[#allocation7 + $0x30] sm:$0xff]  ;;  %s3626_s25 = scalar_lea.vmem %s2813_s19, 256  ;;  %s3632_s22 = scalar_lea.vmem %s3631_s16, 512 }
  0x81   : > { %2977 = vmatmul.mubr.msk.f32.vlgmr.msra.gmra.mxu0 %vm528_vm0, %v3963_v9  ;;  %808 = vmatprep.subr.mxu0 %v735_v10  ;;  %v723_v22 = vld [vmem:[%s5071_s3 + $0x68] sm:$0xff]  ;;  %v722_v23 = vld [vmem:[%s5071_s3 + $0x60] sm:$0xff]  ;;  %5193 = vst [vmem:[#allocation39_spill] sm:$0xff] %v4095_v51  ;;  %v4107_v55 = vld [vmem:[#allocation7 + $0x10] sm:$0xff]  ;;  %p3627_p0 = scmp.ne.s32.totalorder %s2813_s19, %s3626_s25  ;;  %p3633_p9 = scmp.lt.s32.totalorder %s2813_s19, %s3631_s16 }
  0x82   : > { %809 = vmatpush1.msra.mxu0 %v734_v11  ;;  %848 = vmatprep.mubr.f32.mxu0 %v5086_v0  ;;  %v715_v24 = vld [vmem:[%s5071_s3 + $0x28] sm:$0xff]  ;;  %v714_v25 = vld [vmem:[%s5071_s3 + $0x20] sm:$0xff]  ;;  %5197 = vst [vmem:[#allocation43_spill] sm:$0xff] %v4107_v55  ;;  %v504_v59 = vld [vmem:[%s3939_s20 + $0x70] sm:$0xff]  ;;  %p3634_p12 = scmp.lt.s32.totalorder %s3632_s22, %s3626_s25 }
  0x83   : > { %810 = vmatprep.subr.mxu0 %v727_v12  ;;  %v4028_v28 = vld [vmem:[#allocation7 + $0xe8] sm:$0xff]  ;;  %v4031_v29 = vld [vmem:[#allocation7 + $0xe0] sm:$0xff]  ;;  %v4034_v30 = vld [vmem:[#allocation7 + $0xd8] sm:$0xff]  ;;  %p3628_p5 = pnand %p3627_p0, %p3881_p3 }
  0x84   : > { %811 = vmatpush1.msra.mxu0 %v726_v13  ;;  %v4040_v32 = vld [vmem:[#allocation7 + $0xc8] sm:$0xff]  ;;  %v4043_v33 = vld [vmem:[#allocation7 + $0xc0] sm:$0xff]  ;;  %v4046_v34 = vld [vmem:[#allocation7 + $0xb8] sm:$0xff]  ;;  %p3635_p2 = por %p3634_p12, %p3633_p9 }
  0x85   : > { %812 = vmatprep.subr.mxu0 %v719_v14  ;;  %v4052_v36 = vld [vmem:[#allocation7 + $0xa8] sm:$0xff]  ;;  %v4055_v37 = vld [vmem:[#allocation7 + $0xa0] sm:$0xff]  ;;  %v4058_v38 = vld [vmem:[#allocation7 + $0x98] sm:$0xff]  ;;  %p3629_p10 = pneg %p3628_p5 }
  0x86   : > { %813 = vmatpush1.msra.mxu0 %v718_v15  ;;  %5178 = vst [vmem:[#allocation24_spill] sm:$0xff] %v4052_v36  ;;  %5179 = vst [vmem:[#allocation25_spill] sm:$0xff] %v4055_v37  ;;  %v4064_v40 = vld [vmem:[#allocation7 + $0x88] sm:$0xff]  ;;  %v4067_v41 = vld [vmem:[#allocation7 + $0x80] sm:$0xff] }
  0x87   : > { %814 = vmatprep.subr.mxu0 %v711_v16  ;;  %5180 = vst [vmem:[#allocation26_spill] sm:$0xff] %v4058_v38  ;;  %5182 = vst [vmem:[#allocation28_spill] sm:$0xff] %v4064_v40  ;;  %v4069_v42 = vld [vmem:[#allocation7 + $0x78] sm:$0xff]  ;;  %v4074_v44 = vld [vmem:[#allocation7 + $0x68] sm:$0xff]  ;;  %p3636_p4 = pnand %p3635_p2, %p3629_p10 }
  0x88   : > { %815 = vmatpush1.msra.mxu0 %v710_v17  ;;  %5183 = vst [vmem:[#allocation29_spill] sm:$0xff] %v4067_v41  ;;  %5184 = vst [vmem:[#allocation30_spill] sm:$0xff] %v4069_v42  ;;  %v4077_v45 = vld [vmem:[#allocation7 + $0x60] sm:$0xff]  ;;  %v4080_v46 = vld [vmem:[#allocation7 + $0x58] sm:$0xff] }
  0x89   : > { %2979 = vmatmul.mubr.msk.f32.vlgmr.msra.gmra.mxu0 %vm528_vm0, %v3963_v9  ;;  %950 = vmatprep.subr.mxu0 %v739_v18  ;;  %5186 = vst [vmem:[#allocation32_spill] sm:$0xff] %v4074_v44  ;;  %5187 = vst [vmem:[#allocation33_spill] sm:$0xff] %v4077_v45  ;;  %v4086_v48 = vld [vmem:[#allocation7 + $0x48] sm:$0xff]  ;;  %v4089_v49 = vld [vmem:[#allocation7 + $0x40] sm:$0xff]  ;;  %v508_v18 = vlaneseq }
  0x8a   : > { %951 = vmatpush1.msra.mxu0 %v738_v19  ;;  %990 = vmatprep.mubr.f32.mxu0 %v5086_v0  ;;  %5188 = vst [vmem:[#allocation34_spill] sm:$0xff] %v4080_v46  ;;  %5190 = vst [vmem:[#allocation36_spill] sm:$0xff] %v4086_v48  ;;  %v4092_v50 = vld [vmem:[#allocation7 + $0x38] sm:$0xff]  ;;  %v4098_v52 = vld [vmem:[#allocation7 + $0x28] sm:$0xff] }
  0x8b   : > { %952 = vmatprep.subr.mxu0 %v731_v20  ;;  %5191 = vst [vmem:[#allocation37_spill] sm:$0xff] %v4089_v49  ;;  %5192 = vst [vmem:[#allocation38_spill] sm:$0xff] %v4092_v50  ;;  %v4101_v53 = vld [vmem:[#allocation7 + $0x20] sm:$0xff]  ;;  %v4104_v54 = vld [vmem:[#allocation7 + $0x18] sm:$0xff]  ;;  %v4176_v19 = vshrl.u32 %v508_v18, 7 }
  0x8c   : > { %953 = vmatpush1.msra.mxu0 %v730_v21  ;;  %5194 = vst [vmem:[#allocation40_spill] sm:$0xff] %v4098_v52  ;;  %5195 = vst [vmem:[#allocation41_spill] sm:$0xff] %v4101_v53  ;;  %v4110_v56 = vld [vmem:[#allocation7 + $0x8] sm:$0xff]  ;;  %v4113_v57 = vld [vmem:[#allocation7] sm:$0xff] }
  0x8d   : > { %954 = vmatprep.subr.mxu0 %v723_v22  ;;  %5196 = vst [vmem:[#allocation42_spill] sm:$0xff] %v4104_v54  ;;  %5198 = vst [vmem:[#allocation44_spill] sm:$0xff] %v4110_v56  ;;  %v505_v58 = vld [vmem:[%s3939_s20 + $0x78] sm:$0xff]  ;;  %v500_v61 = vld [vmem:[%s3939_s20 + $0x50] sm:$0xff]  ;;  %v4182_v20 = vsub.s32 0, %v4176_v19  ;;  %v4187_v22 = vsub.s32 1, %v4176_v19 }
  0x8e   : > { %955 = vmatpush1.msra.mxu0 %v722_v23  ;;  %5199 = vst [vmem:[#allocation45_spill] sm:$0xff] %v4113_v57  ;;  %v501_v60 = vld [vmem:[%s3939_s20 + $0x58] sm:$0xff]  ;;  %627 = vmatprep.subr.mxu1 %v505_v58  ;;  %v496_v63 = vld [vmem:[%s3939_s20 + $0x30] sm:$0xff]  ;;  %5200 = vst [vmem:[#allocation46_spill] sm:$0xff] %v4176_v19 }
  0x8f   : > { %956 = vmatprep.subr.mxu0 %v715_v24  ;;  %628 = vmatpush1.msra.mxu1 %v504_v59  ;;  %v497_v62 = vld [vmem:[%s3939_s20 + $0x38] sm:$0xff]  ;;  %v492_v2 = vld [vmem:[%s3939_s20 + $0x10] sm:$0xff]  ;;  %5201 = vst [vmem:[#allocation47_spill] sm:$0xff] %v4182_v20 }
  0x90   : > { %957 = vmatpush1.msra.mxu0 %v714_v25  ;;  %629 = vmatprep.subr.mxu1 %v501_v60  ;;  %v493_v1 = vld [vmem:[%s3939_s20 + $0x18] sm:$0xff]  ;;  %v736_v4 = vld [vmem:[%s5071_s3 + $0xd0] sm:$0xff] }
  0x91   : > { %2981 = vmatmul.mubr.msk.f32.vlgmr.msra.gmra.mxu0 %vm528_vm0, %v3963_v9  ;;  %1136 = vmatprep.subr.mxu0 %v4022_v26  ;;  %v737_v3 = vld [vmem:[%s5071_s3 + $0xd8] sm:$0xff]  ;;  %v728_v6 = vld [vmem:[%s5071_s3 + $0x90] sm:$0xff]  ;;  %v4184_v21 = vld [vmem:[%s487_s27] sm:$0xf] }
  0x92   : > { %1200 = vmatprep.mubr.f32.mxu0 %v5086_v0  ;;  %1137 = vmatpush1.msra.mxu0 %v4025_v27  ;;  %v729_v5 = vld [vmem:[%s5071_s3 + $0x98] sm:$0xff]  ;;  %v720_v8 = vld [vmem:[%s5071_s3 + $0x50] sm:$0xff]  ;;  %v511_v23 = vrot.slane %v4184_v21, %v4182_v20  ;;  %v515_v24 = vrot.slane %v4184_v21, %v4187_v22 }
  0x93   : > { %1138 = vmatprep.subr.mxu0 %v4028_v28  ;;  %630 = vmatpush1.msra.mxu1 %v500_v61  ;;  %v721_v7 = vld [vmem:[%s5071_s3 + $0x58] sm:$0xff]  ;;  %v712_v11 = vld [vmem:[%s5071_s3 + $0x10] sm:$0xff] }
  0x94   : > { %1139 = vmatpush1.msra.mxu0 %v4031_v29  ;;  %631 = vmatprep.subr.mxu1 %v497_v62  ;;  %v713_v10 = vld [vmem:[%s5071_s3 + $0x18] sm:$0xff]  ;;  %v740_v13 = vld [vmem:[%s5071_s3 + $0xf0] sm:$0xff] }
  0x95   : > { %1140 = vmatprep.subr.mxu0 %v4034_v30  ;;  %632 = vmatpush1.msra.mxu1 %v496_v63  ;;  %v741_v12 = vld [vmem:[%s5071_s3 + $0xf8] sm:$0xff]  ;;  %v732_v15 = vld [vmem:[%s5071_s3 + $0xb0] sm:$0xff] }
  0x96   : > { %1141 = vmatpush1.msra.mxu0 %v4037_v31  ;;  %633 = vmatprep.subr.mxu1 %v493_v1  ;;  %v733_v14 = vld [vmem:[%s5071_s3 + $0xb8] sm:$0xff]  ;;  %v724_v17 = vld [vmem:[%s5071_s3 + $0x70] sm:$0xff] }
  0x97   : > { %1142 = vmatprep.subr.mxu0 %v4040_v32  ;;  %634 = vmatpush1.msra.mxu1 %v492_v2  ;;  %v725_v16 = vld [vmem:[%s5071_s3 + $0x78] sm:$0xff] }
  0x98   : > { %1143 = vmatpush1.msra.mxu0 %v4043_v33  ;;  %2978 = vmatmul.mubr.msk.f32.vlgmr.msra.gmra.mxu1 %vm528_vm0, %v3963_v9  ;;  %v4268_v18 = vld [vmem:[%s5074_s6 + $0x58] sm:$0xff] }
  0x99   : > { %1144 = vmatprep.subr.mxu0 %v4046_v34  ;;  %879 = vmatprep.subr.mxu1 %v737_v3 }
  0x9a   : > { %1145 = vmatpush1.msra.mxu0 %v4049_v35  ;;  %880 = vmatpush1.msra.mxu1 %v736_v4 }
  0x9b   : > { %1146 = vmatprep.subr.mxu0 %v4052_v36  ;;  %919 = vmatprep.mubr.f32.mxu1 %v5086_v0 }
  0x9c   : > { %1147 = vmatpush1.msra.mxu0 %v4055_v37  ;;  %881 = vmatprep.subr.mxu1 %v729_v5 }
  0x9d   : > { %1148 = vmatprep.subr.mxu0 %v4058_v38  ;;  %882 = vmatpush1.msra.mxu1 %v728_v6 }
  0x9e   : > { %1149 = vmatpush1.msra.mxu0 %v4061_v39  ;;  %883 = vmatprep.subr.mxu1 %v721_v7  ;;  %v717_v7 = vld [vmem:[%s5071_s3 + $0x38] sm:$0xff] }
  0x9f   : > { %1150 = vmatprep.subr.mxu0 %v4064_v40  ;;  %884 = vmatpush1.msra.mxu1 %v720_v8  ;;  %v716_v8 = vld [vmem:[%s5071_s3 + $0x30] sm:$0xff] }
  0xa0   : > { %1151 = vmatpush1.msra.mxu0 %v4067_v41  ;;  %885 = vmatprep.subr.mxu1 %v713_v10  ;;  %v4206_v10 = vld [vmem:[%s5074_s6 + $0xf8] sm:$0xff] }
  0xa1   : > { %1152 = vmatprep.subr.mxu0 %v4069_v42  ;;  %886 = vmatpush1.msra.mxu1 %v712_v11  ;;  %5202 = vst [vmem:[#allocation48_spill] sm:$0xff] %v4206_v10  ;;  %v4212_v11 = vld [vmem:[%s5074_s6 + $0x78] sm:$0xff] }
  0xa2   : > { %1153 = vmatpush1.msra.mxu0 %v4071_v43  ;;  %2980 = vmatmul.mubr.msk.f32.vlgmr.msra.gmra.mxu1 %vm528_vm0, %v3963_v9 }
  0xa3   : > { %1154 = vmatprep.subr.mxu0 %v4074_v44  ;;  %1021 = vmatprep.subr.mxu1 %v741_v12  ;;  %v4226_v12 = vld [vmem:[%s5074_s6 + $0x70] sm:$0xff] }
  0xa4   : > { %1155 = vmatpush1.msra.mxu0 %v4077_v45  ;;  %1022 = vmatpush1.msra.mxu1 %v740_v13  ;;  %v4233_v13 = vld [vmem:[%s5074_s6 + $0xe8] sm:$0xff] }
  0xa5   : > { %1156 = vmatprep.subr.mxu0 %v4080_v46  ;;  %1061 = vmatprep.mubr.f32.mxu1 %v5086_v0  ;;  %v4384_v0 = vld [vmem:[%s5074_s6 + $0x90] sm:$0xff] }
  0xa6   : > { %1157 = vmatpush1.msra.mxu0 %v4083_v47  ;;  %1023 = vmatprep.subr.mxu1 %v733_v14  ;;  %v4240_v14 = vld [vmem:[%s5074_s6 + $0x68] sm:$0xff] }
  0xa7   : > { %1158 = vmatprep.subr.mxu0 %v4086_v48  ;;  %1024 = vmatpush1.msra.mxu1 %v732_v15  ;;  %v4247_v15 = vld [vmem:[%s5074_s6 + $0xe0] sm:$0xff] }
  0xa8   : > { %1159 = vmatpush1.msra.mxu0 %v4089_v49  ;;  %1025 = vmatprep.subr.mxu1 %v725_v16  ;;  %v4254_v16 = vld [vmem:[%s5074_s6 + $0x60] sm:$0xff] }
  0xa9   : > { %1160 = vmatprep.subr.mxu0 %v4092_v50  ;;  %1026 = vmatpush1.msra.mxu1 %v724_v17  ;;  %v4261_v17 = vld [vmem:[%s5074_s6 + $0xd8] sm:$0xff]  ;;  %v5113_v50 = vsub.s32 3, %v4176_v19 }
  0xaa   : > { %1161 = vmatpush1.msra.mxu0 %v4095_v51  ;;  %1027 = vmatprep.subr.mxu1 %v717_v7  ;;  %v4370_v7 = vld [vmem:[%s5074_s6 + $0x98] sm:$0xff] }
  0xab   : > { %1162 = vmatprep.subr.mxu0 %v4098_v52  ;;  %1028 = vmatpush1.msra.mxu1 %v716_v8  ;;  %v4377_v8 = vld [vmem:[%s5074_s6 + $0x18] sm:$0xff]  ;;  %v5110_v52 = vsub.s32 2, %v4176_v19  ;;  %v523_v48 = vrot.slane %v4184_v21, %v5113_v50 }
  0xac   : > { %1163 = vmatpush1.msra.mxu0 %v4101_v53  ;;  %2982 = vmatmul.mubr.msk.f32.vlgmr.msra.gmra.mxu1 %vm528_vm0, %v3963_v9  ;;  %v4219_v9 = vld [vmem:[%s5074_s6 + $0xf0] sm:$0xff]  ;;  %v4419_v53 = vld [vmem:[%s5074_s6] sm:$0xff] }
  0xad   : > { %1164 = vmatprep.subr.mxu0 %v4104_v54  ;;  %3002 = vmatprep.subr.mxu1 %v4206_v10  ;;  %v4412_v54 = vld [vmem:[%s5074_s6 + $0x80] sm:$0xff]  ;;  %v519_v49 = vrot.slane %v4184_v21, %v5110_v52 }
  0xae   : > { %1165 = vmatpush1.msra.mxu0 %v4107_v55  ;;  %3003 = vmatpush3.msra.mxu1 %v4212_v11  ;;  %v4405_v55 = vld [vmem:[%s5074_s6 + $0x8] sm:$0xff] }
  0xaf   : > { %1166 = vmatprep.subr.mxu0 %v4110_v56  ;;  %3004 = vmatprep.subr.mxu1 %v4219_v9  ;;  %v4398_v56 = vld [vmem:[%s5074_s6 + $0x88] sm:$0xff] }
  0xb0   : > { %1167 = vmatpush1.msra.mxu0 %v4113_v57  ;;  %3005 = vmatpush3.msra.mxu1 %v4226_v12  ;;  %v4391_v57 = vld [vmem:[%s5074_s6 + $0x10] sm:$0xff] }
  0xb1   : > { %3037 = vmatprep.subr.mxu0 %v4206_v10  ;;  %3006 = vmatprep.subr.mxu1 %v4233_v13 }
  0xb2   : > { %3007 = vmatpush3.msra.mxu1 %v4240_v14 }
  0xb3   : > { %3008 = vmatprep.subr.mxu1 %v4247_v15 }
  0xb4   : > { %3009 = vmatpush3.msra.mxu1 %v4254_v16 }
  0xb5   : > { %3010 = vmatprep.subr.mxu1 %v4261_v17 }
  0xb6   : > { %3011 = vmatpush3.msra.mxu1 %v4268_v18 }
 0x141   : > { %v598_v25 = vpop.f32.mrf.mxu0 }
 0x142   : > { %v599_v58 = vadd.f32 %v598_v25, %v511_v23  ;;  %v4275_v23 = vld [vmem:[%s5074_s6 + $0xd0] sm:$0xff]  ;;  %v4289_v25 = vld [vmem:[%s5074_s6 + $0xc8] sm:$0xff] }
 0x143   : > { %v600_v59 = vpop.f32.mrf.mxu0  ;;  %3012 = vmatprep.subr.mxu1 %v4275_v23 }
 0x144   : > { %v674_v60 = vmul.f32 %v599_v58, %v599_v58  ;;  %v4193_v61 = vadd.f32 %v600_v59, %v515_v24  ;;  %v4282_v24 = vld [vmem:[%s5074_s6 + $0x50] sm:$0xff]  ;;  %v4300_v59 = vld [vmem:[%s5074_s6 + $0xc0] sm:$0xff] }
 0x145   : > { %3013 = vmatpush3.msra.mxu1 %v4282_v24 }
 0x146   : > { %v678_v62 = vmul.f32 %v674_v60, %v599_v58  ;;  %3014 = vmatprep.subr.mxu1 %v4289_v25  ;;  %v4307_v60 = vld [vmem:[%s5074_s6 + $0x40] sm:$0xff] }
 0x148   : > { %v682_v63 = vmul.f32 0.044715, %v678_v62  ;;  %v4314_v62 = vld [vmem:[%s5074_s6 + $0xb8] sm:$0xff] }
 0x149   : > { %v850_v44 = vpop.f32.mrf.mxu0 }
 0x14a   : > { %v686_v1 = vadd.f32 %v682_v63, %v599_v58  ;;  %v4321_v63 = vld [vmem:[%s5074_s6 + $0x38] sm:$0xff] }
 0x14b   : > { %v852_v43 = vpop.f32.mrf.mxu0 }
 0x14c   : > { %v690_v2 = vmul.f32 0.7978846, %v686_v1  ;;  %v4328_v1 = vld [vmem:[%s5074_s6 + $0xb0] sm:$0xff] }
 0x14e   : > { %3385 = vtanh.f32 %v690_v2  ;;  %v4335_v2 = vld [vmem:[%s5074_s6 + $0x30] sm:$0xff] }
 0x151   : > { %v4442_v42 = vpop.f32.mrf.mxu0 }
 0x152   : > { %5206 = vst [vmem:[#allocation52_spill] sm:$0xff] %v4442_v42 }
 0x153   : > { %v4448_v19 = vpop.f32.mrf.mxu0 }
 0x154   : > { %5207 = vst [vmem:[#allocation53_spill] sm:$0xff] %v4448_v19 }
 0x158   : > { %v669_v51 = vpop.f32.mrf.mxu1 }
 0x159   : > { %v4436_v46 = vadd.f32 %v669_v51, %v519_v49 }
 0x15a   : > { %v671_v47 = vpop.f32.mrf.mxu1 }
 0x15b   : > { %v3386_v3 = vpop.eup %3385  ;;  %5203 = vst [vmem:[#allocation49_spill] sm:$0xff] %v4436_v46  ;;  %v4438_v45 = vadd.f32 %v671_v47, %v523_v48 }
 0x15c   : > { %v698_v4 = vadd.f32 1.0, %v3386_v3  ;;  %v4342_v3 = vld [vmem:[%s5074_s6 + $0xa8] sm:$0xff] }
 0x15d   : > { %5204 = vst [vmem:[#allocation50_spill] sm:$0xff] %v4438_v45 }
 0x15e   : > { %v702_v5 = vmul.f32 0.5, %v698_v4  ;;  %v4349_v4 = vld [vmem:[%s5074_s6 + $0x28] sm:$0xff] }
 0x160   : > { %v706_v6 = vmul.f32 %v702_v5, %v599_v58  ;;  %v4294_v58 = vld [vmem:[%s5074_s6 + $0x48] sm:$0xff]  ;;  %v4356_v5 = vld [vmem:[%s5074_s6 + $0xa0] sm:$0xff] }
 0x161   : > { %3015 = vmatpush3.msra.mxu1 %v4294_v58 }
 0x162   : > { %1201 = vmatmul.mubr.f32.vlgmr.msra.gmra.mxu0 %v706_v6  ;;  %3016 = vmatprep.subr.mxu1 %v4300_v59  ;;  %v4363_v6 = vld [vmem:[%s5074_s6 + $0x20] sm:$0xff] }
 0x163   : > { %3038 = vmatpush3.msra.mxu0 %v4212_v11  ;;  %3017 = vmatpush3.msra.mxu1 %v4307_v60 }
 0x164   : > { %3039 = vmatprep.subr.mxu0 %v4219_v9  ;;  %3018 = vmatprep.subr.mxu1 %v4314_v62 }
 0x165   : > { %3040 = vmatpush3.msra.mxu0 %v4226_v12  ;;  %3019 = vmatpush3.msra.mxu1 %v4321_v63 }
 0x166   : > { %3041 = vmatprep.subr.mxu0 %v4233_v13  ;;  %3020 = vmatprep.subr.mxu1 %v4328_v1 }
 0x167   : > { %3042 = vmatpush3.msra.mxu0 %v4240_v14  ;;  %3021 = vmatpush3.msra.mxu1 %v4335_v2 }
 0x168   : > { %3043 = vmatprep.subr.mxu0 %v4247_v15  ;;  %3022 = vmatprep.subr.mxu1 %v4342_v3 }
 0x169   : > { %3044 = vmatpush3.msra.mxu0 %v4254_v16  ;;  %3023 = vmatpush3.msra.mxu1 %v4349_v4 }
 0x16a   : > { %3045 = vmatprep.subr.mxu0 %v4261_v17  ;;  %3024 = vmatprep.subr.mxu1 %v4356_v5 }
 0x16b   : > { %3046 = vmatpush3.msra.mxu0 %v4268_v18  ;;  %3025 = vmatpush3.msra.mxu1 %v4363_v6 }
 0x16c   : > { %3047 = vmatprep.subr.mxu0 %v4275_v23  ;;  %3026 = vmatprep.subr.mxu1 %v4370_v7 }
 0x16d   : > { %3048 = vmatpush3.msra.mxu0 %v4282_v24  ;;  %3027 = vmatpush3.msra.mxu1 %v4377_v8 }
 0x16e   : > { %3049 = vmatprep.subr.mxu0 %v4289_v25  ;;  %3028 = vmatprep.subr.mxu1 %v4384_v0 }
 0x16f   : > { %3050 = vmatpush3.msra.mxu0 %v4294_v58  ;;  %3029 = vmatpush3.msra.mxu1 %v4391_v57 }
 0x170   : > { %3051 = vmatprep.subr.mxu0 %v4300_v59  ;;  %3030 = vmatprep.subr.mxu1 %v4398_v56 }
 0x171   : > { %3052 = vmatpush3.msra.mxu0 %v4307_v60  ;;  %3031 = vmatpush3.msra.mxu1 %v4405_v55 }
 0x172   : > { %3053 = vmatprep.subr.mxu0 %v4314_v62  ;;  %3032 = vmatprep.subr.mxu1 %v4412_v54 }
 0x173   : > { %3054 = vmatpush3.msra.mxu0 %v4321_v63  ;;  %3033 = vmatpush3.msra.mxu1 %v4419_v53 }
 0x174   : > { %3055 = vmatprep.subr.mxu0 %v4328_v1 }
 0x175   : > { %3056 = vmatpush3.msra.mxu0 %v4335_v2 }
 0x176   : > { %3057 = vmatprep.subr.mxu0 %v4342_v3 }
 0x177   : > { %3058 = vmatpush3.msra.mxu0 %v4349_v4 }
 0x178   : > { %3059 = vmatprep.subr.mxu0 %v4356_v5 }
 0x179   : > { %3060 = vmatpush3.msra.mxu0 %v4363_v6 }
 0x17a   : > { %3061 = vmatprep.subr.mxu0 %v4370_v7 }
 0x17b   : > { %3062 = vmatpush3.msra.mxu0 %v4377_v8 }
 0x17c   : > { %3063 = vmatprep.subr.mxu0 %v4384_v0 }
 0x17d   : > { %3064 = vmatpush3.msra.mxu0 %v4391_v57 }
 0x17e   : > { %3065 = vmatprep.subr.mxu0 %v4398_v56 }
 0x17f   : > { %3066 = vmatpush3.msra.mxu0 %v4405_v55 }
 0x180   : > { %3067 = vmatprep.subr.mxu0 %v4412_v54 }
 0x181   : > { %3068 = vmatpush3.msra.mxu0 %v4419_v53 }
 0x182   : > { %3072 = vmatprep.subr.mxu0 %v4206_v10  ;;  %v4440_v10 = vld [vmem:[#allocation8] sm:$0xff] }
 0x183   : > { %5205 = vst [vmem:[#allocation51_spill] sm:$0xff] %v4440_v10  ;;  %v747_v41 = vrot.slane %v4440_v10, %v4182_v20  ;;  %v751_v52 = vrot.slane %v4440_v10, %v4187_v22 }
 0x185   : > { %v851_v21 = vadd.f32 %v850_v44, %v747_v41  ;;  %v853_v49 = vadd.f32 %v852_v43, %v751_v52 }
 0x222   : > { %v1202_v50 = vpop.f32.mrf.mxu0 }
 0x223   : > { %v1207_v51 = vadd.f32 %v1202_v50, %v851_v21 }
 0x224   : > { %v1204_v47 = vpop.f32.mrf.mxu0 }
 0x225   : > { %v1209_v48 = vmul.f32 %v1207_v51, %v1207_v51  ;;  %v1208_v45 = vadd.f32 %v1204_v47, %v853_v49 }
 0x227   : > { %v1211_v46 = vmul.f32 %v1209_v48, %v1207_v51  ;;  %v1210_v40 = vmul.f32 %v1208_v45, %v1208_v45 }
 0x229   : > { %v1213_v39 = vmul.f32 0.044715, %v1211_v46  ;;  %v1212_v38 = vmul.f32 %v1210_v40, %v1208_v45  ;;  %v4500_v40 = vpop.f32.mrf.mxu1  ;;  %v675_v46 = vmul.f32 %v4193_v61, %v4193_v61 }
 0x22b   : > { %v1215_v42 = vadd.f32 %v1213_v39, %v1207_v51  ;;  %v1214_v37 = vmul.f32 0.044715, %v1212_v38  ;;  %v4494_v39 = vld [vmem:[#allocation10] sm:$0xff] }
 0x22d   : > { %v1217_v36 = vmul.f32 0.7978846, %v1215_v42  ;;  %v1216_v20 = vadd.f32 %v1214_v37, %v1208_v45  ;;  %v4492_v37 = vld [vmem:[#allocation10 + $0x8] sm:$0xff]  ;;  %v4502_v42 = vpop.f32.mrf.mxu1 }
 0x22e   : > { %1403 = vmatprep.subr.mxu1 %v4492_v37 }
 0x22f   : > { %3387 = vtanh.f32 %v1217_v36  ;;  %v1218_v35 = vmul.f32 0.7978846, %v1216_v20  ;;  %v5208_v36 = vmov 0.0   ;;  %v679_v20 = vmul.f32 %v675_v46, %v4193_v61  ;;  %v5221_v46 = vld [vmem:[#allocation33_spill] sm:$0xff] }
 0x231   : > { %3389 = vtanh.f32 %v1218_v35  ;;  %v683_v47 = vmul.f32 0.044715, %v679_v20  ;;  %v5222_v20 = vld [vmem:[#allocation34_spill] sm:$0xff] }
 0x23c   : > { %v3388_v10 = vpop.eup %3387 }
 0x23d   : > { %v1221_v19 = vadd.f32 1.0, %v3388_v10 }
 0x23e   : > { %v3390_v41 = vpop.eup %3389 }
 0x23f   : > { %v1222_v44 = vadd.f32 1.0, %v3390_v41  ;;  %v1223_v43 = vmul.f32 0.5, %v1221_v19 }
 0x241   : > { %v1224_v50 = vmul.f32 0.5, %v1222_v44  ;;  %v4450_v52 = vmul.f32 %v1223_v43, %v1207_v51  ;;  %v687_v44 = vadd.f32 %v683_v47, %v4193_v61  ;;  %v5225_v47 = vld [vmem:[#allocation37_spill] sm:$0xff] }
 0x243   : > { %v4452_v21 = vmul.f32 %v1224_v50, %v1208_v45  ;;  %v1297_v35 = vmul.f32 %v4450_v52, %v4450_v52  ;;  %v4504_v45 = vpop.f32.mrf.mxu1  ;;  %v691_v50 = vmul.f32 0.7978846, %v687_v44  ;;  %v5228_v44 = vld [vmem:[#allocation40_spill] sm:$0xff] }
 0x244   : > { %5209 = vst [vmem:[#allocation54_spill] sm:$0xff] %v4504_v45 }
 0x245   : > { %1291 = vmatprep.mubr.f32.mxu1 %v4452_v21  ;;  %v1298_v38 = vmul.f32 %v4452_v21, %v4452_v21  ;;  %v4508_v19 = vpop.f32.mrf.mxu1  ;;  %3391 = vtanh.f32 %v691_v50  ;;  %v5229_v50 = vld [vmem:[#allocation41_spill] sm:$0xff] }
 0x246   : > { %1292 = vmatmul.mubr.f32.vlgmr.msra.gmra.mxu1 %v4450_v52  ;;  %5210 = vst [vmem:[#allocation55_spill] sm:$0xff] %v4508_v19 }
 0x247   : > { %1363 = vmatprep.mubr.f32.mxu0 %v1298_v38  ;;  %1437 = vmatprep.mubr.f32.mxu1 %v5208_v36  ;;  %v5213_v38 = vld [vmem:[#allocation25_spill] sm:$0xff] }
 0x248   : > { %1364 = vmatmul.mubr.f32.vlgmr.msra.gmra.mxu0 %v1297_v35  ;;  %1404 = vmatpush1.msra.mxu1 %v4494_v39  ;;  %v5218_v35 = vld [vmem:[#allocation30_spill] sm:$0xff] }
 0x249   : > { %3073 = vmatpush3.msra.mxu0 %v4212_v11  ;;  %1477 = vmatprep.subr.mxu1 %v4492_v37 }
 0x24a   : > { %3074 = vmatprep.subr.mxu0 %v4219_v9 }
 0x24b   : > { %3075 = vmatpush3.msra.mxu0 %v4226_v12 }
 0x24c   : > { %3076 = vmatprep.subr.mxu0 %v4233_v13 }
 0x24d   : > { %3077 = vmatpush3.msra.mxu0 %v4240_v14 }
 0x24e   : > { %3078 = vmatprep.subr.mxu0 %v4247_v15 }
 0x24f   : > { %3079 = vmatpush3.msra.mxu0 %v4254_v16 }
 0x250   : > { %3080 = vmatprep.subr.mxu0 %v4261_v17 }
 0x251   : > { %3081 = vmatpush3.msra.mxu0 %v4268_v18 }
 0x252   : > { %3082 = vmatprep.subr.mxu0 %v4275_v23 }
 0x253   : > { %3083 = vmatpush3.msra.mxu0 %v4282_v24 }
 0x254   : > { %3084 = vmatprep.subr.mxu0 %v4289_v25 }
 0x255   : > { %3085 = vmatpush3.msra.mxu0 %v4294_v58 }
 0x256   : > { %3086 = vmatprep.subr.mxu0 %v4300_v59 }
 0x257   : > { %3087 = vmatpush3.msra.mxu0 %v4307_v60 }
 0x258   : > { %3088 = vmatprep.subr.mxu0 %v4314_v62 }
 0x259   : > { %3089 = vmatpush3.msra.mxu0 %v4321_v63 }
 0x25a   : > { %3090 = vmatprep.subr.mxu0 %v4328_v1 }
 0x25b   : > { %3091 = vmatpush3.msra.mxu0 %v4335_v2 }
 0x25c   : > { %3092 = vmatprep.subr.mxu0 %v4342_v3 }
 0x25d   : > { %3093 = vmatpush3.msra.mxu0 %v4349_v4 }
 0x25e   : > { %3094 = vmatprep.subr.mxu0 %v4356_v5 }
 0x25f   : > { %3095 = vmatpush3.msra.mxu0 %v4363_v6 }
 0x260   : > { %3096 = vmatprep.subr.mxu0 %v4370_v7 }
 0x261   : > { %3097 = vmatpush3.msra.mxu0 %v4377_v8 }
 0x262   : > { %3098 = vmatprep.subr.mxu0 %v4384_v0 }
 0x263   : > { %3099 = vmatpush3.msra.mxu0 %v4391_v57 }
 0x264   : > { %3100 = vmatprep.subr.mxu0 %v4398_v56 }
 0x265   : > { %3101 = vmatpush3.msra.mxu0 %v4405_v55 }
 0x266   : > { %3102 = vmatprep.subr.mxu0 %v4412_v54 }
 0x267   : > { %3103 = vmatpush3.msra.mxu0 %v4419_v53 }
 0x268   : > { %1834 = vmatprep.subr.mxu0 %v4492_v37 }
 0x306   : > { %v3034_v10 = vpop.f32.mrf.mxu1 }
 0x308   : > { %v3035_v49 = vpop.f32.mrf.mxu1  ;;  %v3069_v51 = vpop.f32.mrf.mxu0 }
 0x309   : > { %v3036_v48 = vadd.f32 %v3035_v49, %v3034_v10  ;;  %v5223_v10 = vld [vmem:[#allocation35_spill] sm:$0xff]  ;;  %v5224_v49 = vld [vmem:[#allocation36_spill] sm:$0xff] }
 0x30a   : > { %v3070_v41 = vpop.f32.mrf.mxu0 }
 0x30b   : > { %2983 = vmatmul.mubr.msk.f32.vlgmr.msra.gmra.mxu1 %vm1369_vm1, %v3036_v48  ;;  %v3071_v43 = vadd.f32 %v3070_v41, %v3069_v51  ;;  %v5226_v48 = vld [vmem:[#allocation38_spill] sm:$0xff]  ;;  %v5227_v41 = vld [vmem:[#allocation39_spill] sm:$0xff] }
 0x30c   : > { %1478 = vmatpush1.msra.mxu1 %v4494_v39  ;;  %1511 = vmatprep.mubr.f32.mxu1 %v5208_v36 }
 0x30d   : > { %1568 = vmatprep.subr.mxu1 %v4022_v26  ;;  %v5211_v26 = vld [vmem:[#allocation23_spill] sm:$0xff] }
 0x30f   : > { %2984 = vmatmul.mubr.msk.f32.vlgmr.msra.gmra.mxu1 %vm1369_vm1, %v3071_v43 }
 0x310   : > { %1569 = vmatpush1.msra.mxu1 %v4025_v27  ;;  %1632 = vmatprep.mubr.f32.mxu1 %v5208_v36  ;;  %v5212_v27 = vld [vmem:[#allocation24_spill] sm:$0xff] }
 0x311   : > { %1570 = vmatprep.subr.mxu1 %v4028_v28  ;;  %v5214_v28 = vld [vmem:[#allocation26_spill] sm:$0xff] }
 0x312   : > { %1571 = vmatpush1.msra.mxu1 %v4031_v29  ;;  %v5215_v29 = vld [vmem:[#allocation27_spill] sm:$0xff] }
 0x313   : > { %1572 = vmatprep.subr.mxu1 %v4034_v30  ;;  %v5216_v30 = vld [vmem:[#allocation28_spill] sm:$0xff] }
 0x314   : > { %1573 = vmatpush1.msra.mxu1 %v4037_v31  ;;  %v5217_v31 = vld [vmem:[#allocation29_spill] sm:$0xff] }
 0x315   : > { %1574 = vmatprep.subr.mxu1 %v4040_v32  ;;  %v5219_v32 = vld [vmem:[#allocation31_spill] sm:$0xff] }
 0x316   : > { %1575 = vmatpush1.msra.mxu1 %v4043_v33  ;;  %v5220_v33 = vld [vmem:[#allocation32_spill] sm:$0xff] }
 0x317   : > { %1576 = vmatprep.subr.mxu1 %v4046_v34  ;;  %v3392_v34 = vpop.eup %3391 }
 0x318   : > { %1577 = vmatpush1.msra.mxu1 %v5211_v26  ;;  %v699_v51 = vadd.f32 1.0, %v3392_v34  ;;  %v5230_v26 = vld [vmem:[#allocation42_spill] sm:$0xff] }
 0x319   : > { %1578 = vmatprep.subr.mxu1 %v5212_v27  ;;  %v5231_v27 = vld [vmem:[#allocation43_spill] sm:$0xff] }
 0x31a   : > { %1579 = vmatpush1.msra.mxu1 %v5213_v38  ;;  %v703_v43 = vmul.f32 0.5, %v699_v51  ;;  %v5232_v38 = vld [vmem:[#allocation44_spill] sm:$0xff]  ;;  %v1134_v51 = vld [vmem:[%s5076_s8] sm:$0x3] }
 0x31b   : > { %1580 = vmatprep.subr.mxu1 %v5214_v28 }
 0x31c   : > { %1581 = vmatpush1.msra.mxu1 %v5215_v29  ;;  %v707_v28 = vmul.f32 %v703_v43, %v4193_v61  ;;  %v5233_v29 = vld [vmem:[#allocation45_spill] sm:$0xff]  ;;  %v1135_v43 = vld [vmem:[%s5077_s9] sm:$0x3] }
 0x31d   : > { %1582 = vmatprep.subr.mxu1 %v5216_v30  ;;  %v5234_v30 = vld [vmem:[#allocation48_spill] sm:$0xff] }
 0x31e   : > { %1583 = vmatpush1.msra.mxu1 %v5217_v31 }
 0x31f   : > { %1584 = vmatprep.subr.mxu1 %v5218_v35 }
 0x320   : > { %1585 = vmatpush1.msra.mxu1 %v5219_v32 }
 0x321   : > { %1586 = vmatprep.subr.mxu1 %v5220_v33 }
 0x322   : > { %1587 = vmatpush1.msra.mxu1 %v5221_v46 }
 0x323   : > { %1588 = vmatprep.subr.mxu1 %v5222_v20 }
 0x324   : > { %1589 = vmatpush1.msra.mxu1 %v5223_v10 }
 0x325   : > { %1590 = vmatprep.subr.mxu1 %v5224_v49 }
 0x326   : > { %1591 = vmatpush1.msra.mxu1 %v5225_v47  ;;  %v5235_v47 = vld [vmem:[#allocation47_spill] sm:$0xff] }
 0x327   : > { %1592 = vmatprep.subr.mxu1 %v5226_v48  ;;  %v4587_v48 = vrot.slane %v1134_v51, %v5235_v47 }
 0x328   : > { %1593 = vmatpush1.msra.mxu1 %v5227_v41 }
 0x329   : > { %1594 = vmatprep.subr.mxu1 %v5228_v44 }
 0x32a   : > { %1595 = vmatpush1.msra.mxu1 %v5229_v50  ;;  %v4594_v50 = vrot.slane %v1134_v51, %v4187_v22 }
 0x32b   : > { %1596 = vmatprep.subr.mxu1 %v5230_v26 }
 0x32c   : > { %1597 = vmatpush1.msra.mxu1 %v5231_v27  ;;  %5236 = vst [vmem:[#allocation23_spill] sm:$0xff] %v4594_v50 }
 0x32d   : > { %1598 = vmatprep.subr.mxu1 %v5232_v38 }
 0x32e   : > { %1599 = vmatpush1.msra.mxu1 %v5233_v29 }
 0x32f   : > { %1633 = vmatmul.mubr.f32.vlgmr.msra.gmra.mxu1 %v707_v28  ;;  %3107 = vmatprep.subr.mxu1 %v5234_v30 }
 0x330   : > { %3108 = vmatpush3.msra.mxu1 %v4212_v11 }
 0x331   : > { %3109 = vmatprep.subr.mxu1 %v4219_v9 }
 0x332   : > { %3110 = vmatpush3.msra.mxu1 %v4226_v12 }
 0x333   : > { %3111 = vmatprep.subr.mxu1 %v4233_v13 }
 0x334   : > { %3112 = vmatpush3.msra.mxu1 %v4240_v14 }
 0x335   : > { %3113 = vmatprep.subr.mxu1 %v4247_v15 }
 0x336   : > { %3114 = vmatpush3.msra.mxu1 %v4254_v16 }
 0x337   : > { %3115 = vmatprep.subr.mxu1 %v4261_v17 }
 0x338   : > { %3116 = vmatpush3.msra.mxu1 %v4268_v18 }
 0x339   : > { %3117 = vmatprep.subr.mxu1 %v4275_v23 }
 0x33a   : > { %3118 = vmatpush3.msra.mxu1 %v4282_v24 }
 0x33b   : > { %3119 = vmatprep.subr.mxu1 %v4289_v25 }
 0x33c   : > { %3120 = vmatpush3.msra.mxu1 %v4294_v58 }
 0x33d   : > { %3121 = vmatprep.subr.mxu1 %v4300_v59 }
 0x33e   : > { %3122 = vmatpush3.msra.mxu1 %v4307_v60 }
 0x33f   : > { %3123 = vmatprep.subr.mxu1 %v4314_v62 }
 0x340   : > { %3124 = vmatpush3.msra.mxu1 %v4321_v63 }
 0x341   : > { %3125 = vmatprep.subr.mxu1 %v4328_v1 }
 0x342   : > { %3126 = vmatpush3.msra.mxu1 %v4335_v2 }
 0x343   : > { %3127 = vmatprep.subr.mxu1 %v4342_v3 }
 0x344   : > { %3128 = vmatpush3.msra.mxu1 %v4349_v4 }
 0x345   : > { %3129 = vmatprep.subr.mxu1 %v4356_v5 }
 0x346   : > { %3130 = vmatpush3.msra.mxu1 %v4363_v6 }
 0x347   : > { %3131 = vmatprep.subr.mxu1 %v4370_v7 }
 0x348   : > { %3132 = vmatpush3.msra.mxu1 %v4377_v8 }
 0x349   : > { %3133 = vmatprep.subr.mxu1 %v4384_v0 }
 0x34a   : > { %3134 = vmatpush3.msra.mxu1 %v4391_v57 }
 0x34b   : > { %3135 = vmatprep.subr.mxu1 %v4398_v56 }
 0x34c   : > { %3136 = vmatpush3.msra.mxu1 %v4405_v55 }
 0x34d   : > { %3137 = vmatprep.subr.mxu1 %v4412_v54 }
 0x34e   : > { %3138 = vmatpush3.msra.mxu1 %v4419_v53 }
 0x34f   : > { %3142 = vmatprep.subr.mxu1 %v5234_v30 }
 0x3cb   : > { %v1439_v61 = vpop.f32.mrf.mxu1 }
 0x3cc   : > { %v1518_v35 = vmul.f32 %v1439_v61, %v1439_v61  ;;  %v1522_v41 = vsub.f32 %v4450_v52, %v1439_v61 }
 0x3cd   : > { %v1441_v31 = vpop.f32.mrf.mxu1 }
 0x3ce   : > { %v1519_v33 = vmul.f32 %v1441_v31, %v1441_v31  ;;  %v1523_v26 = vsub.f32 %v4452_v21, %v1441_v31  ;;  %v5241_v31 = vld [vmem:[#allocation51_spill] sm:$0xff] }
 0x3cf   : > { %v1513_v32 = vpop.f32.mrf.mxu1 }
 0x3d0   : > { %v1520_v34 = vsub.f32 %v1513_v32, %v1518_v35  ;;  %v4598_v32 = vrot.slane %v1135_v43, %v5235_v47 }
 0x3d1   : > { %v1515_v46 = vpop.f32.mrf.mxu1 }
 0x3d2   : > { %v1524_v20 = vadd.f32 3.125e-07, %v1520_v34  ;;  %v1521_v10 = vsub.f32 %v1515_v46, %v1519_v33  ;;  %5237 = vst [vmem:[#allocation24_spill] sm:$0xff] %v4598_v32  ;;  %v4601_v33 = vrot.slane %v1135_v43, %v4187_v22 }
 0x3d4   : > { %3393 = vrsqrt.f32 %v1524_v20  ;;  %v1525_v49 = vadd.f32 3.125e-07, %v1521_v10  ;;  %5238 = vst [vmem:[#allocation25_spill] sm:$0xff] %v4601_v33  ;;  %v5239_v10 = vld [vmem:[#allocation46_spill] sm:$0xff] }
 0x3d5   : > { %v5240_v21 = vsub.s32 2, %v5239_v10  ;;  %v5242_v47 = vsub.s32 3, %v5239_v10 }
 0x3d6   : > { %3395 = vrsqrt.f32 %v1525_v49 }
 0x3d7   : > { %v755_v49 = vrot.slane %v5241_v31, %v5240_v21  ;;  %v759_v22 = vrot.slane %v5241_v31, %v5242_v47 }
 0x3d9   : > { %v924_v43 = vadd.f32 %v4502_v42, %v759_v22 }
 0x3e1   : > { %v3394_v44 = vpop.eup %3393 }
 0x3e2   : > { %v1528_v28 = vmul.f32 %v3394_v44, %v1522_v41  ;;  %v922_v41 = vadd.f32 %v4500_v40, %v755_v49 }
 0x3e3   : > { %v3396_v35 = vpop.eup %3395 }
 0x3e4   : > { %v1541_v52 = vmul.f32 %v4587_v48, %v1528_v28  ;;  %v1529_v61 = vmul.f32 %v3396_v35, %v1523_v26 }
 0x3e6   : > { %v1542_v34 = vmul.f32 %v4594_v50, %v1529_v61  ;;  %v1554_v46 = vadd.f32 %v4598_v32, %v1541_v52 }
 0x3e8   : > { %v1555_v20 = vadd.f32 %v4601_v33, %v1542_v34 }
 0x3ea   : > { %v1558_v51 = vcombine.low %v1554_v46, %v1555_v20 }
 0x3ec   : > { %2985 = vst.sshfl [vmem:[%s4614_s4] sm:$0x33 pattern:$0x76325410] %v1558_v51 }
 0x3ef   : > { %v1634_v44 = vpop.f32.mrf.mxu1 }
 0x3f0   : > { %v1639_v26 = vadd.f32 %v1634_v44, %v922_v41 }
 0x3f1   : > { %v1636_v28 = vpop.f32.mrf.mxu1 }
 0x3f2   : > { %v1641_v35 = vmul.f32 %v1639_v26, %v1639_v26  ;;  %v1640_v52 = vadd.f32 %v1636_v28, %v924_v43 }
 0x3f4   : > { %v1643_v61 = vmul.f32 %v1641_v35, %v1639_v26  ;;  %v1642_v34 = vmul.f32 %v1640_v52, %v1640_v52 }
 0x3f6   : > { %v1645_v46 = vmul.f32 0.044715, %v1643_v61  ;;  %v1644_v20 = vmul.f32 %v1642_v34, %v1640_v52 }
 0x3f8   : > { %v1647_v21 = vadd.f32 %v1645_v46, %v1639_v26  ;;  %v1646_v19 = vmul.f32 0.044715, %v1644_v20 }
 0x3fa   : > { %v1649_v47 = vmul.f32 0.7978846, %v1647_v21  ;;  %v1648_v45 = vadd.f32 %v1646_v19, %v1640_v52  ;;  %v5243_v19 = vld [vmem:[#allocation49_spill] sm:$0xff]  ;;  %v4671_v21 = vld [vmem:[#allocation7 + $0xf8] sm:$0xff] }
 0x3fc   : > { %3397 = vtanh.f32 %v1649_v47  ;;  %v1650_v31 = vmul.f32 0.7978846, %v1648_v45  ;;  %v4675_v47 = vld [vmem:[#allocation7 + $0xf0] sm:$0xff] }
 0x3fe   : > { %3399 = vtanh.f32 %v1650_v31 }
 0x409   : > { %v3398_v51 = vpop.eup %3397 }
 0x40a   : > { %v1653_v40 = vadd.f32 1.0, %v3398_v51 }
 0x40b   : > { %v3400_v49 = vpop.eup %3399 }
 0x40c   : > { %v1654_v33 = vadd.f32 1.0, %v3400_v49  ;;  %v1655_v42 = vmul.f32 0.5, %v1653_v40  ;;  %v4679_v40 = vld [vmem:[#allocation7 + $0xe8] sm:$0xff]  ;;  %v4682_v49 = vld [vmem:[#allocation7 + $0xe0] sm:$0xff] }
 0x40e   : > { %v1656_v22 = vmul.f32 0.5, %v1654_v33  ;;  %v4619_v41 = vmul.f32 %v1655_v42, %v1639_v26  ;;  %v676_v33 = vmul.f32 %v5243_v19, %v5243_v19  ;;  %v4685_v42 = vld [vmem:[#allocation7 + $0xd8] sm:$0xff] }
 0x410   : > { %v4621_v44 = vmul.f32 %v1656_v22, %v1640_v52  ;;  %v1729_v45 = vmul.f32 %v4619_v41, %v4619_v41  ;;  %v680_v31 = vmul.f32 %v676_v33, %v5243_v19  ;;  %v4688_v22 = vld [vmem:[#allocation7 + $0xd0] sm:$0xff]  ;;  %v4697_v33 = vld [vmem:[#allocation7 + $0xb8] sm:$0xff] }
 0x412   : > { %1723 = vmatprep.mubr.f32.mxu0 %v4621_v44  ;;  %v1730_v43 = vmul.f32 %v4621_v44, %v4621_v44  ;;  %v684_v52 = vmul.f32 0.044715, %v680_v31  ;;  %v4700_v31 = vld [vmem:[#allocation7 + $0xb0] sm:$0xff] }
 0x413   : > { %1724 = vmatmul.mubr.f32.vlgmr.msra.gmra.mxu0 %v4619_v41 }
 0x414   : > { %1795 = vmatprep.mubr.f32.mxu1 %v1730_v43  ;;  %1835 = vmatpush1.msra.mxu0 %v4494_v39  ;;  %v688_v46 = vadd.f32 %v684_v52, %v5243_v19  ;;  %v4691_v43 = vld [vmem:[#allocation7 + $0xc8] sm:$0xff]  ;;  %v4712_v52 = vld [vmem:[#allocation7 + $0x90] sm:$0xff] }
 0x415   : > { %1796 = vmatmul.mubr.f32.vlgmr.msra.gmra.mxu1 %v1729_v45  ;;  %1868 = vmatprep.mubr.f32.mxu0 %v5208_v36  ;;  %v4694_v45 = vld [vmem:[#allocation7 + $0xc0] sm:$0xff]  ;;  %5247 = vst [vmem:[#allocation29_spill] sm:$0xff] %v4712_v52 }
 0x416   : > { %1908 = vmatprep.subr.mxu0 %v4492_v37  ;;  %3143 = vmatpush3.msra.mxu1 %v4212_v11  ;;  %v692_v51 = vmul.f32 0.7978846, %v688_v46  ;;  %v4721_v46 = vld [vmem:[#allocation7 + $0x78] sm:$0xff] }
 0x417   : > { %3144 = vmatprep.subr.mxu1 %v4219_v9  ;;  %5250 = vst [vmem:[#allocation32_spill] sm:$0xff] %v4721_v46 }
 0x418   : > { %3145 = vmatpush3.msra.mxu1 %v4226_v12  ;;  %3401 = vtanh.f32 %v692_v51  ;;  %v4727_v51 = vld [vmem:[#allocation7 + $0x68] sm:$0xff] }
 0x419   : > { %3146 = vmatprep.subr.mxu1 %v4233_v13  ;;  %5252 = vst [vmem:[#allocation34_spill] sm:$0xff] %v4727_v51 }
 0x41a   : > { %3147 = vmatpush3.msra.mxu1 %v4240_v14 }
 0x41b   : > { %3148 = vmatprep.subr.mxu1 %v4247_v15 }
 0x41c   : > { %3149 = vmatpush3.msra.mxu1 %v4254_v16 }
 0x41d   : > { %3150 = vmatprep.subr.mxu1 %v4261_v17 }
 0x41e   : > { %3151 = vmatpush3.msra.mxu1 %v4268_v18 }
 0x41f   : > { %3152 = vmatprep.subr.mxu1 %v4275_v23 }
 0x420   : > { %3153 = vmatpush3.msra.mxu1 %v4282_v24 }
 0x421   : > { %3154 = vmatprep.subr.mxu1 %v4289_v25 }
 0x422   : > { %3155 = vmatpush3.msra.mxu1 %v4294_v58 }
 0x423   : > { %3156 = vmatprep.subr.mxu1 %v4300_v59 }
 0x424   : > { %3157 = vmatpush3.msra.mxu1 %v4307_v60 }
 0x425   : > { %3158 = vmatprep.subr.mxu1 %v4314_v62 }
 0x426   : > { %3159 = vmatpush3.msra.mxu1 %v4321_v63 }
 0x427   : > { %3160 = vmatprep.subr.mxu1 %v4328_v1 }
 0x428   : > { %3161 = vmatpush3.msra.mxu1 %v4335_v2 }
 0x429   : > { %3162 = vmatprep.subr.mxu1 %v4342_v3 }
 0x42a   : > { %3163 = vmatpush3.msra.mxu1 %v4349_v4 }
 0x42b   : > { %3164 = vmatprep.subr.mxu1 %v4356_v5 }
 0x42c   : > { %3165 = vmatpush3.msra.mxu1 %v4363_v6 }
 0x42d   : > { %3166 = vmatprep.subr.mxu1 %v4370_v7 }
 0x42e   : > { %3167 = vmatpush3.msra.mxu1 %v4377_v8 }
 0x42f   : > { %3168 = vmatprep.subr.mxu1 %v4384_v0 }
 0x430   : > { %3169 = vmatpush3.msra.mxu1 %v4391_v57 }
 0x431   : > { %3170 = vmatprep.subr.mxu1 %v4398_v56 }
 0x432   : > { %3171 = vmatpush3.msra.mxu1 %v4405_v55 }
 0x433   : > { %3172 = vmatprep.subr.mxu1 %v4412_v54 }
 0x434   : > { %3173 = vmatpush3.msra.mxu1 %v4419_v53 }
 0x435   : > { %2243 = vmatprep.subr.mxu1 %v4492_v37 }
 0x4d3   : > { %v3104_v26 = vpop.f32.mrf.mxu0 }
 0x4d5   : > { %v3105_v28 = vpop.f32.mrf.mxu0  ;;  %v3139_v35 = vpop.f32.mrf.mxu1 }
 0x4d6   : > { %v3106_v61 = vadd.f32 %v3105_v28, %v3104_v26  ;;  %v4703_v26 = vld [vmem:[#allocation7 + $0xa8] sm:$0xff]  ;;  %v4706_v28 = vld [vmem:[#allocation7 + $0xa0] sm:$0xff] }
 0x4d7   : > { %v3140_v34 = vpop.f32.mrf.mxu1  ;;  %5244 = vst [vmem:[#allocation26_spill] sm:$0xff] %v4703_v26  ;;  %5245 = vst [vmem:[#allocation27_spill] sm:$0xff] %v4706_v28 }
 0x4d8   : > { %2986 = vmatmul.mubr.msk.f32.vlgmr.msra.gmra.mxu0 %vm1369_vm1, %v3106_v61  ;;  %v3141_v20 = vadd.f32 %v3140_v34, %v3139_v35  ;;  %v4709_v35 = vld [vmem:[#allocation7 + $0x98] sm:$0xff]  ;;  %v4715_v61 = vld [vmem:[#allocation7 + $0x88] sm:$0xff]  ;;  %v4718_v34 = vld [vmem:[#allocation7 + $0x80] sm:$0xff] }
 0x4d9   : > { %1909 = vmatpush1.msra.mxu0 %v4494_v39  ;;  %1942 = vmatprep.mubr.f32.mxu0 %v5208_v36  ;;  %5246 = vst [vmem:[#allocation28_spill] sm:$0xff] %v4709_v35  ;;  %5248 = vst [vmem:[#allocation30_spill] sm:$0xff] %v4715_v61 }
 0x4da   : > { %1977 = vmatprep.subr.mxu0 %v4671_v21  ;;  %5249 = vst [vmem:[#allocation31_spill] sm:$0xff] %v4718_v34 }
 0x4dc   : > { %2987 = vmatmul.mubr.msk.f32.vlgmr.msra.gmra.mxu0 %vm1369_vm1, %v3141_v20  ;;  %v4724_v20 = vld [vmem:[#allocation7 + $0x70] sm:$0xff] }
 0x4dd   : > { %1978 = vmatpush1.msra.mxu0 %v4675_v47  ;;  %2041 = vmatprep.mubr.f32.mxu0 %v5208_v36  ;;  %5251 = vst [vmem:[#allocation33_spill] sm:$0xff] %v4724_v20 }
 0x4de   : > { %1979 = vmatprep.subr.mxu0 %v4679_v40 }
 0x4df   : > { %1980 = vmatpush1.msra.mxu0 %v4682_v49 }
 0x4e0   : > { %1981 = vmatprep.subr.mxu0 %v4685_v42 }
 0x4e1   : > { %1982 = vmatpush1.msra.mxu0 %v4688_v22 }
 0x4e2   : > { %1983 = vmatprep.subr.mxu0 %v4691_v43 }
 0x4e3   : > { %1984 = vmatpush1.msra.mxu0 %v4694_v45 }
 0x4e4   : > { %1985 = vmatprep.subr.mxu0 %v4697_v33 }
 0x4e5   : > { %1986 = vmatpush1.msra.mxu0 %v4700_v31 }
 0x4e6   : > { %1987 = vmatprep.subr.mxu0 %v4703_v26  ;;  %v4754_v26 = vld [vmem:[#allocation7 + $0x20] sm:$0xff] }
 0x4e7   : > { %1988 = vmatpush1.msra.mxu0 %v4706_v28  ;;  %v4742_v28 = vld [vmem:[#allocation7 + $0x40] sm:$0xff]  ;;  %5259 = vst [vmem:[#allocation41_spill] sm:$0xff] %v4754_v26 }
 0x4e8   : > { %1989 = vmatprep.subr.mxu0 %v4709_v35  ;;  %v4730_v35 = vld [vmem:[#allocation7 + $0x60] sm:$0xff] }
 0x4e9   : > { %1990 = vmatpush1.msra.mxu0 %v4712_v52  ;;  %v3402_v52 = vpop.eup %3401  ;;  %5253 = vst [vmem:[#allocation35_spill] sm:$0xff] %v4730_v35 }
 0x4ea   : > { %1991 = vmatprep.subr.mxu0 %v4715_v61  ;;  %v4733_v61 = vld [vmem:[#allocation7 + $0x58] sm:$0xff] }
 0x4eb   : > { %1992 = vmatpush1.msra.mxu0 %v4718_v34  ;;  %5254 = vst [vmem:[#allocation36_spill] sm:$0xff] %v4733_v61  ;;  %v4736_v34 = vld [vmem:[#allocation7 + $0x50] sm:$0xff] }
 0x4ec   : > { %1993 = vmatprep.subr.mxu0 %v4721_v46  ;;  %5255 = vst [vmem:[#allocation37_spill] sm:$0xff] %v4736_v34  ;;  %v4739_v46 = vld [vmem:[#allocation7 + $0x48] sm:$0xff] }
 0x4ed   : > { %1994 = vmatpush1.msra.mxu0 %v4724_v20  ;;  %v700_v20 = vadd.f32 1.0, %v3402_v52  ;;  %v4757_v52 = vld [vmem:[#allocation7 + $0x18] sm:$0xff] }
 0x4ee   : > { %1995 = vmatprep.subr.mxu0 %v4727_v51  ;;  %v4745_v51 = vld [vmem:[#allocation7 + $0x38] sm:$0xff]  ;;  %5260 = vst [vmem:[#allocation42_spill] sm:$0xff] %v4757_v52 }
 0x4ef   : > { %1996 = vmatpush1.msra.mxu0 %v4730_v35  ;;  %5256 = vst [vmem:[#allocation38_spill] sm:$0xff] %v4745_v51  ;;  %v4748_v35 = vld [vmem:[#allocation7 + $0x30] sm:$0xff] }
 0x4f0   : > { %1997 = vmatprep.subr.mxu0 %v4733_v61  ;;  %5257 = vst [vmem:[#allocation39_spill] sm:$0xff] %v4748_v35  ;;  %v4751_v61 = vld [vmem:[#allocation7 + $0x28] sm:$0xff] }
 0x4f1   : > { %1998 = vmatpush1.msra.mxu0 %v4736_v34  ;;  %5258 = vst [vmem:[#allocation40_spill] sm:$0xff] %v4751_v61  ;;  %v704_v34 = vmul.f32 0.5, %v700_v20 }
 0x4f2   : > { %1999 = vmatprep.subr.mxu0 %v4739_v46 }
 0x4f3   : > { %2000 = vmatpush1.msra.mxu0 %v4742_v28 }
 0x4f4   : > { %2001 = vmatprep.subr.mxu0 %v4745_v51  ;;  %v708_v51 = vmul.f32 %v704_v34, %v5243_v19 }
 0x4f5   : > { %2002 = vmatpush1.msra.mxu0 %v4748_v35  ;;  %v762_v35 = vsub.s32 4, %v5239_v10 }
 0x4f6   : > { %2003 = vmatprep.subr.mxu0 %v4751_v61 }
 0x4f7   : > { %2004 = vmatpush1.msra.mxu0 %v4754_v26 }
 0x4f8   : > { %2005 = vmatprep.subr.mxu0 %v4757_v52 }
 0x4f9   : > { %2006 = vmatpush1.msra.mxu0 %v5231_v27 }
 0x4fa   : > { %2007 = vmatprep.subr.mxu0 %v5232_v38 }
 0x4fb   : > { %2008 = vmatpush1.msra.mxu0 %v5233_v29 }
 0x4fc   : > { %2042 = vmatmul.mubr.f32.vlgmr.msra.gmra.mxu0 %v708_v51  ;;  %3177 = vmatprep.subr.mxu0 %v5234_v30 }
 0x4fd   : > { %3178 = vmatpush3.msra.mxu0 %v4212_v11 }
 0x4fe   : > { %3179 = vmatprep.subr.mxu0 %v4219_v9 }
 0x4ff   : > { %3180 = vmatpush3.msra.mxu0 %v4226_v12 }
 0x500   : > { %3181 = vmatprep.subr.mxu0 %v4233_v13 }
 0x501   : > { %3182 = vmatpush3.msra.mxu0 %v4240_v14 }
 0x502   : > { %3183 = vmatprep.subr.mxu0 %v4247_v15 }
 0x503   : > { %3184 = vmatpush3.msra.mxu0 %v4254_v16 }
 0x504   : > { %3185 = vmatprep.subr.mxu0 %v4261_v17 }
 0x505   : > { %3186 = vmatpush3.msra.mxu0 %v4268_v18 }
 0x506   : > { %3187 = vmatprep.subr.mxu0 %v4275_v23 }
 0x507   : > { %3188 = vmatpush3.msra.mxu0 %v4282_v24 }
 0x508   : > { %3189 = vmatprep.subr.mxu0 %v4289_v25 }
 0x509   : > { %3190 = vmatpush3.msra.mxu0 %v4294_v58 }
 0x50a   : > { %3191 = vmatprep.subr.mxu0 %v4300_v59 }
 0x50b   : > { %3192 = vmatpush3.msra.mxu0 %v4307_v60 }
 0x50c   : > { %3193 = vmatprep.subr.mxu0 %v4314_v62 }
 0x50d   : > { %3194 = vmatpush3.msra.mxu0 %v4321_v63 }
 0x50e   : > { %3195 = vmatprep.subr.mxu0 %v4328_v1 }
 0x50f   : > { %3196 = vmatpush3.msra.mxu0 %v4335_v2 }
 0x510   : > { %3197 = vmatprep.subr.mxu0 %v4342_v3 }
 0x511   : > { %3198 = vmatpush3.msra.mxu0 %v4349_v4 }
 0x512   : > { %3199 = vmatprep.subr.mxu0 %v4356_v5 }
 0x513   : > { %3200 = vmatpush3.msra.mxu0 %v4363_v6 }
 0x514   : > { %3201 = vmatprep.subr.mxu0 %v4370_v7 }
 0x515   : > { %3202 = vmatpush3.msra.mxu0 %v4377_v8 }
 0x516   : > { %3203 = vmatprep.subr.mxu0 %v4384_v0 }
 0x517   : > { %3204 = vmatpush3.msra.mxu0 %v4391_v57 }
 0x518   : > { %3205 = vmatprep.subr.mxu0 %v4398_v56 }
 0x519   : > { %3206 = vmatpush3.msra.mxu0 %v4405_v55 }
 0x51a   : > { %3207 = vmatprep.subr.mxu0 %v4412_v54 }
 0x51b   : > { %3208 = vmatpush3.msra.mxu0 %v4419_v53 }
 0x51c   : > { %3212 = vmatprep.subr.mxu0 %v5234_v30 }
 0x598   : > { %v1870_v11 = vpop.f32.mrf.mxu0 }
 0x599   : > { %v1949_v12 = vmul.f32 %v1870_v11, %v1870_v11  ;;  %v1953_v34 = vsub.f32 %v4619_v41, %v1870_v11 }
 0x59a   : > { %v1872_v9 = vpop.f32.mrf.mxu0 }
 0x59b   : > { %v1950_v14 = vmul.f32 %v1872_v9, %v1872_v9  ;;  %v1954_v51 = vsub.f32 %v4621_v44, %v1872_v9  ;;  %v5263_v9 = vld [vmem:[#allocation52_spill] sm:$0xff] }
 0x59c   : > { %v1944_v13 = vpop.f32.mrf.mxu0 }
 0x59d   : > { %v1951_v15 = vsub.f32 %v1944_v13, %v1949_v12  ;;  %v766_v13 = vsub.s32 5, %v5239_v10 }
 0x59e   : > { %v1946_v27 = vpop.f32.mrf.mxu0 }
 0x59f   : > { %v1955_v38 = vadd.f32 3.125e-07, %v1951_v15  ;;  %v1952_v29 = vsub.f32 %v1946_v27, %v1950_v14  ;;  %v5261_v15 = vld [vmem:[#allocation25_spill] sm:$0xff] }
 0x5a1   : > { %3403 = vrsqrt.f32 %v1955_v38  ;;  %v1956_v19 = vadd.f32 3.125e-07, %v1952_v29  ;;  %v5262_v38 = vld [vmem:[#allocation51_spill] sm:$0xff] }
 0x5a2   : > { %v763_v41 = vrot.slane %v5262_v38, %v762_v35  ;;  %v767_v44 = vrot.slane %v5262_v38, %v766_v13 }
 0x5a3   : > { %3405 = vrsqrt.f32 %v1956_v19  ;;  %v5264_v19 = vld [vmem:[#allocation53_spill] sm:$0xff] }
 0x5a4   : > { %v993_v29 = vadd.f32 %v5263_v9, %v763_v41 }
 0x5ae   : > { %v3404_v20 = vpop.eup %3403 }
 0x5af   : > { %v1959_v52 = vmul.f32 %v3404_v20, %v1953_v34  ;;  %v995_v34 = vadd.f32 %v5264_v19, %v767_v44  ;;  %v4838_v19 = vld [vmem:[%s5074_s6 + $0x70] sm:$0xff] }
 0x5b0   : > { %v3406_v30 = vpop.eup %3405 }
 0x5b1   : > { %v1961_v26 = vmul.f32 %v1959_v52, %v4587_v48  ;;  %v1960_v61 = vmul.f32 %v3406_v30, %v1954_v51 }
 0x5b3   : > { %v1962_v12 = vmul.f32 %v1960_v61, %v4594_v50  ;;  %v1963_v14 = vadd.f32 %v1961_v26, %v4598_v32 }
 0x5b5   : > { %v1964_v27 = vadd.f32 %v1962_v12, %v5261_v15 }
 0x5b7   : > { %v1967_v11 = vcombine.low %v1963_v14, %v1964_v27 }
 0x5b9   : > { %2988 = vst.sshfl [vmem:[%s4614_s4 + $0x4] sm:$0x33 pattern:$0x76325410] %v1967_v11 }
 0x5bc   : > { %v2043_v52 = vpop.f32.mrf.mxu0 }
 0x5bd   : > { %v2048_v20 = vadd.f32 %v2043_v52, %v993_v29 }
 0x5be   : > { %v2045_v51 = vpop.f32.mrf.mxu0 }
 0x5bf   : > { %v2050_v61 = vmul.f32 %v2048_v20, %v2048_v20  ;;  %v2049_v30 = vadd.f32 %v2045_v51, %v995_v34  ;;  %v4844_v34 = vld [vmem:[%s5074_s6 + $0xe8] sm:$0xff]  ;;  %v4856_v51 = vld [vmem:[%s5074_s6 + $0xe0] sm:$0xff] }
 0x5c1   : > { %v2052_v50 = vmul.f32 %v2050_v61, %v2048_v20  ;;  %v2051_v10 = vmul.f32 %v2049_v30, %v2049_v30  ;;  %v3466_v61 = vld [vmem:[%s5074_s6 + $0x58] sm:$0xff] }
 0x5c3   : > { %v2054_v26 = vmul.f32 0.044715, %v2052_v50  ;;  %v2053_v32 = vmul.f32 %v2051_v10, %v2049_v30  ;;  %v4826_v10 = vld [vmem:[%s5074_s6 + $0x78] sm:$0xff] }
 0x5c5   : > { %v2056_v12 = vadd.f32 %v2054_v26, %v2048_v20  ;;  %v2055_v15 = vmul.f32 0.044715, %v2053_v32  ;;  %v3468_v26 = vld [vmem:[%s5074_s6 + $0x50] sm:$0xff] }
 0x5c7   : > { %v2058_v35 = vmul.f32 0.7978846, %v2056_v12  ;;  %v2057_v14 = vadd.f32 %v2055_v15, %v2049_v30  ;;  %v4832_v15 = vld [vmem:[%s5074_s6 + $0xf0] sm:$0xff]  ;;  %v3469_v12 = vld [vmem:[%s5074_s6 + $0xc8] sm:$0xff] }
 0x5c9   : > { %3407 = vtanh.f32 %v2058_v35  ;;  %v2059_v13 = vmul.f32 0.7978846, %v2057_v14  ;;  %v3470_v35 = vld [vmem:[%s5074_s6 + $0x48] sm:$0xff]  ;;  %v3471_v14 = vld [vmem:[%s5074_s6 + $0xc0] sm:$0xff] }
 0x5cb   : > { %3409 = vtanh.f32 %v2059_v13  ;;  %v3472_v13 = vld [vmem:[%s5074_s6 + $0x40] sm:$0xff] }
 0x5d6   : > { %v3408_v27 = vpop.eup %3407 }
 0x5d7   : > { %v2062_v38 = vadd.f32 1.0, %v3408_v27  ;;  %v3473_v27 = vld [vmem:[%s5074_s6 + $0xb8] sm:$0xff] }
 0x5d8   : > { %v3410_v41 = vpop.eup %3409 }
 0x5d9   : > { %v2063_v11 = vadd.f32 1.0, %v3410_v41  ;;  %v2064_v44 = vmul.f32 0.5, %v2062_v38  ;;  %v3474_v38 = vld [vmem:[%s5074_s6 + $0x38] sm:$0xff]  ;;  %v3475_v41 = vld [vmem:[%s5074_s6 + $0xb0] sm:$0xff] }
 0x5db   : > { %v2065_v9 = vmul.f32 0.5, %v2063_v11  ;;  %v4810_v29 = vmul.f32 %v2064_v44, %v2048_v20  ;;  %v4850_v20 = vld [vmem:[%s5074_s6 + $0x68] sm:$0xff]  ;;  %v3476_v11 = vld [vmem:[%s5074_s6 + $0x30] sm:$0xff] }
 0x5dc   : > { %v3477_v44 = vld [vmem:[%s5074_s6 + $0xa8] sm:$0xff] }
 0x5dd   : > { %v4812_v52 = vmul.f32 %v2065_v9, %v2049_v30  ;;  %v2138_v32 = vmul.f32 %v4810_v29, %v4810_v29  ;;  %v3467_v30 = vld [vmem:[%s5074_s6 + $0xd0] sm:$0xff]  ;;  %v3478_v9 = vld [vmem:[%s5074_s6 + $0x28] sm:$0xff] }
 0x5df   : > { %2132 = vmatprep.mubr.f32.mxu1 %v4812_v52  ;;  %v2139_v50 = vmul.f32 %v4812_v52, %v4812_v52 }
 0x5e0   : > { %2133 = vmatmul.mubr.f32.vlgmr.msra.gmra.mxu1 %v4810_v29 }
 0x5e1   : > { %2204 = vmatprep.mubr.f32.mxu0 %v2139_v50  ;;  %2244 = vmatpush1.msra.mxu1 %v4494_v39  ;;  %v3479_v50 = vld [vmem:[%s5074_s6 + $0xa0] sm:$0xff] }
 0x5e2   : > { %2205 = vmatmul.mubr.f32.vlgmr.msra.gmra.mxu0 %v2138_v32  ;;  %2277 = vmatprep.mubr.f32.mxu1 %v5208_v36  ;;  %v3480_v32 = vld [vmem:[%s5074_s6 + $0x20] sm:$0xff] }
 0x5e3   : > { %2317 = vmatprep.subr.mxu1 %v4492_v37  ;;  %3213 = vmatpush3.msra.mxu0 %v4826_v10 }
 0x5e4   : > { %3214 = vmatprep.subr.mxu0 %v4832_v15 }
 0x5e5   : > { %3215 = vmatpush3.msra.mxu0 %v4838_v19 }
 0x5e6   : > { %3216 = vmatprep.subr.mxu0 %v4844_v34 }
 0x5e7   : > { %3217 = vmatpush3.msra.mxu0 %v4850_v20 }
 0x5e8   : > { %3218 = vmatprep.subr.mxu0 %v4856_v51 }
 0x5e9   : > { %3219 = vmatpush3.msra.mxu0 %v4254_v16  ;;  %v5265_v16 = vld [vmem:[#allocation50_spill] sm:$0xff] }
 0x5ea   : > { %3220 = vmatprep.subr.mxu0 %v4261_v17  ;;  %v677_v17 = vmul.f32 %v5265_v16, %v5265_v16 }
 0x5eb   : > { %3221 = vmatpush3.msra.mxu0 %v4268_v18 }
 0x5ec   : > { %3222 = vmatprep.subr.mxu0 %v4275_v23  ;;  %v681_v18 = vmul.f32 %v677_v17, %v5265_v16  ;;  %v3488_v17 = vld [vmem:[%s5074_s6] sm:$0xff] }
 0x5ed   : > { %3223 = vmatpush3.msra.mxu0 %v4282_v24 }
 0x5ee   : > { %3224 = vmatprep.subr.mxu0 %v4289_v25  ;;  %v685_v25 = vmul.f32 0.044715, %v681_v18 }
 0x5ef   : > { %3225 = vmatpush3.msra.mxu0 %v4294_v58 }
 0x5f0   : > { %3226 = vmatprep.subr.mxu0 %v4300_v59  ;;  %v5267_v59 = vld [vmem:[#allocation27_spill] sm:$0xff] }
 0x5f1   : > { %3227 = vmatpush3.msra.mxu0 %v4307_v60  ;;  %v5268_v60 = vld [vmem:[#allocation28_spill] sm:$0xff] }
 0x5f2   : > { %3228 = vmatprep.subr.mxu0 %v4314_v62  ;;  %v5269_v62 = vld [vmem:[#allocation29_spill] sm:$0xff] }
 0x5f3   : > { %3229 = vmatpush3.msra.mxu0 %v4321_v63  ;;  %v5270_v63 = vld [vmem:[#allocation30_spill] sm:$0xff] }
 0x5f4   : > { %3230 = vmatprep.subr.mxu0 %v4328_v1  ;;  %v5271_v1 = vld [vmem:[#allocation31_spill] sm:$0xff] }
 0x5f5   : > { %3231 = vmatpush3.msra.mxu0 %v4335_v2  ;;  %v5272_v2 = vld [vmem:[#allocation32_spill] sm:$0xff] }
 0x5f6   : > { %3232 = vmatprep.subr.mxu0 %v4342_v3  ;;  %v5273_v3 = vld [vmem:[#allocation33_spill] sm:$0xff] }
 0x5f7   : > { %3233 = vmatpush3.msra.mxu0 %v4349_v4  ;;  %v5274_v4 = vld [vmem:[#allocation34_spill] sm:$0xff] }
 0x5f8   : > { %3234 = vmatprep.subr.mxu0 %v4356_v5 }
 0x5f9   : > { %3235 = vmatpush3.msra.mxu0 %v4363_v6  ;;  %v5275_v6 = vld [vmem:[#allocation35_spill] sm:$0xff] }
 0x5fa   : > { %3236 = vmatprep.subr.mxu0 %v4370_v7  ;;  %v5276_v7 = vld [vmem:[#allocation36_spill] sm:$0xff] }
 0x5fb   : > { %3237 = vmatpush3.msra.mxu0 %v4377_v8  ;;  %v5277_v8 = vld [vmem:[#allocation37_spill] sm:$0xff] }
 0x5fc   : > { %3238 = vmatprep.subr.mxu0 %v4384_v0 }
 0x5fd   : > { %3239 = vmatpush3.msra.mxu0 %v4391_v57 }
 0x5fe   : > { %3240 = vmatprep.subr.mxu0 %v4398_v56  ;;  %v5266_v56 = vld [vmem:[#allocation26_spill] sm:$0xff] }
 0x5ff   : > { %3241 = vmatpush3.msra.mxu0 %v4405_v55 }
 0x600   : > { %3242 = vmatprep.subr.mxu0 %v4412_v54 }
 0x601   : > { %3243 = vmatpush3.msra.mxu0 %v4419_v53  ;;  %v689_v53 = vadd.f32 %v685_v25, %v5265_v16 }
 0x602   : > { %2652 = vmatprep.subr.mxu0 %v4492_v37 }
 0x603   : > { %v693_v55 = vmul.f32 0.7978846, %v689_v53 }
 0x605   : > { %3411 = vtanh.f32 %v693_v55 }
 0x612   : > { %v3412_v5 = vpop.eup %3411 }
 0x613   : > { %v701_v37 = vadd.f32 1.0, %v3412_v5  ;;  %v5284_v5 = vld [vmem:[#allocation23_spill] sm:$0xff] }
 0x6a0   : > { %v3174_v23 = vpop.f32.mrf.mxu1 }
 0x6a2   : > { %v3175_v24 = vpop.f32.mrf.mxu1  ;;  %v3209_v0 = vpop.f32.mrf.mxu0 }
 0x6a3   : > { %v3176_v57 = vadd.f32 %v3175_v24, %v3174_v23 }
 0x6a4   : > { %v3210_v58 = vpop.f32.mrf.mxu0 }
 0x6a5   : > { %2989 = vmatmul.mubr.msk.f32.vlgmr.msra.gmra.mxu1 %vm1369_vm1, %v3176_v57  ;;  %v3211_v54 = vadd.f32 %v3210_v58, %v3209_v0 }
 0x6a6   : > { %2318 = vmatpush1.msra.mxu1 %v4494_v39  ;;  %2351 = vmatprep.mubr.f32.mxu1 %v5208_v36  ;;  %v5278_v39 = vld [vmem:[#allocation38_spill] sm:$0xff] }
 0x6a7   : > { %2386 = vmatprep.subr.mxu1 %v4671_v21  ;;  %v5279_v21 = vld [vmem:[#allocation39_spill] sm:$0xff] }
 0x6a9   : > { %2990 = vmatmul.mubr.msk.f32.vlgmr.msra.gmra.mxu1 %vm1369_vm1, %v3211_v54 }
 0x6aa   : > { %2387 = vmatpush1.msra.mxu1 %v4675_v47  ;;  %2450 = vmatprep.mubr.f32.mxu1 %v5208_v36  ;;  %v5280_v47 = vld [vmem:[#allocation40_spill] sm:$0xff] }
 0x6ab   : > { %2388 = vmatprep.subr.mxu1 %v4679_v40  ;;  %v705_v40 = vmul.f32 0.5, %v701_v37 }
 0x6ac   : > { %2389 = vmatpush1.msra.mxu1 %v4682_v49  ;;  %v5281_v49 = vld [vmem:[#allocation41_spill] sm:$0xff] }
 0x6ad   : > { %2390 = vmatprep.subr.mxu1 %v4685_v42  ;;  %v5282_v42 = vld [vmem:[#allocation42_spill] sm:$0xff] }
 0x6ae   : > { %2391 = vmatpush1.msra.mxu1 %v4688_v22  ;;  %v3460_v22 = vld [vmem:[#allocation7 + $0x10] sm:$0xff] }
 0x6af   : > { %2392 = vmatprep.subr.mxu1 %v4691_v43  ;;  %v3461_v43 = vld [vmem:[#allocation7 + $0x8] sm:$0xff] }
 0x6b0   : > { %2393 = vmatpush1.msra.mxu1 %v4694_v45  ;;  %v709_v45 = vmul.f32 %v705_v40, %v5265_v16  ;;  %v3487_v16 = vld [vmem:[%s5074_s6 + $0x80] sm:$0xff] }
 0x6b1   : > { %2394 = vmatprep.subr.mxu1 %v4697_v33  ;;  %v3462_v33 = vld [vmem:[#allocation7] sm:$0xff] }
 0x6b2   : > { %2395 = vmatpush1.msra.mxu1 %v4700_v31  ;;  %v3463_v31 = vld [vmem:[%s5074_s6 + $0xf8] sm:$0xff] }
 0x6b3   : > { %2396 = vmatprep.subr.mxu1 %v5266_v56 }
 0x6b4   : > { %2397 = vmatpush1.msra.mxu1 %v5267_v59 }
 0x6b5   : > { %2398 = vmatprep.subr.mxu1 %v5268_v60 }
 0x6b6   : > { %2399 = vmatpush1.msra.mxu1 %v5269_v62 }
 0x6b7   : > { %2400 = vmatprep.subr.mxu1 %v5270_v63 }
 0x6b8   : > { %2401 = vmatpush1.msra.mxu1 %v5271_v1 }
 0x6b9   : > { %2402 = vmatprep.subr.mxu1 %v5272_v2 }
 0x6ba   : > { %2403 = vmatpush1.msra.mxu1 %v5273_v3  ;;  %v5283_v3 = vld [vmem:[#allocation46_spill] sm:$0xff] }
 0x6bb   : > { %2404 = vmatprep.subr.mxu1 %v5274_v4  ;;  %v770_v4 = vsub.s32 6, %v5283_v3 }
 0x6bc   : > { %2405 = vmatpush1.msra.mxu1 %v5275_v6 }
 0x6bd   : > { %2406 = vmatprep.subr.mxu1 %v5276_v7  ;;  %v774_v7 = vsub.s32 7, %v5283_v3 }
 0x6be   : > { %2407 = vmatpush1.msra.mxu1 %v5277_v8  ;;  %v5285_v8 = vld [vmem:[#allocation24_spill] sm:$0xff] }
 0x6bf   : > { %2408 = vmatprep.subr.mxu1 %v4739_v46  ;;  %v3465_v46 = vld [vmem:[%s5074_s6 + $0xd8] sm:$0xff] }
 0x6c0   : > { %2409 = vmatpush1.msra.mxu1 %v4742_v28  ;;  %v3464_v28 = vld [vmem:[%s5074_s6 + $0x60] sm:$0xff] }
 0x6c1   : > { %2410 = vmatprep.subr.mxu1 %v5278_v39  ;;  %v5286_v39 = vld [vmem:[#allocation25_spill] sm:$0xff] }
 0x6c2   : > { %2411 = vmatpush1.msra.mxu1 %v5279_v21 }
 0x6c3   : > { %2412 = vmatprep.subr.mxu1 %v5280_v47 }
 0x6c4   : > { %2413 = vmatpush1.msra.mxu1 %v5281_v49 }
 0x6c5   : > { %2414 = vmatprep.subr.mxu1 %v5282_v42 }
 0x6c6   : > { %2415 = vmatpush1.msra.mxu1 %v3460_v22 }
 0x6c7   : > { %2416 = vmatprep.subr.mxu1 %v3461_v43  ;;  %v5288_v43 = vld [vmem:[#allocation55_spill] sm:$0xff] }
 0x6c8   : > { %2417 = vmatpush1.msra.mxu1 %v3462_v33 }
 0x6c9   : > { %2451 = vmatmul.mubr.f32.vlgmr.msra.gmra.mxu1 %v709_v45  ;;  %3247 = vmatprep.subr.mxu1 %v3463_v31 }
 0x6ca   : > { %3248 = vmatpush3.msra.mxu1 %v4826_v10  ;;  %v3481_v10 = vld [vmem:[%s5074_s6 + $0x98] sm:$0xff] }
 0x6cb   : > { %3249 = vmatprep.subr.mxu1 %v4832_v15  ;;  %v3482_v15 = vld [vmem:[%s5074_s6 + $0x18] sm:$0xff] }
 0x6cc   : > { %3250 = vmatpush3.msra.mxu1 %v4838_v19  ;;  %v3483_v19 = vld [vmem:[%s5074_s6 + $0x90] sm:$0xff] }
 0x6cd   : > { %3251 = vmatprep.subr.mxu1 %v4844_v34  ;;  %v3484_v34 = vld [vmem:[%s5074_s6 + $0x10] sm:$0xff] }
 0x6ce   : > { %3252 = vmatpush3.msra.mxu1 %v4850_v20  ;;  %v3485_v20 = vld [vmem:[%s5074_s6 + $0x88] sm:$0xff] }
 0x6cf   : > { %3253 = vmatprep.subr.mxu1 %v4856_v51  ;;  %v3486_v51 = vld [vmem:[%s5074_s6 + $0x8] sm:$0xff] }
 0x6d0   : > { %3254 = vmatpush3.msra.mxu1 %v3464_v28 }
 0x6d1   : > { %3255 = vmatprep.subr.mxu1 %v3465_v46 }
 0x6d2   : > { %3256 = vmatpush3.msra.mxu1 %v3466_v61 }
 0x6d3   : > { %3257 = vmatprep.subr.mxu1 %v3467_v30 }
 0x6d4   : > { %3258 = vmatpush3.msra.mxu1 %v3468_v26 }
 0x6d5   : > { %3259 = vmatprep.subr.mxu1 %v3469_v12 }
 0x6d6   : > { %3260 = vmatpush3.msra.mxu1 %v3470_v35 }
 0x6d7   : > { %3261 = vmatprep.subr.mxu1 %v3471_v14 }
 0x6d8   : > { %3262 = vmatpush3.msra.mxu1 %v3472_v13 }
 0x6d9   : > { %3263 = vmatprep.subr.mxu1 %v3473_v27 }
 0x6da   : > { %3264 = vmatpush3.msra.mxu1 %v3474_v38 }
 0x6db   : > { %3265 = vmatprep.subr.mxu1 %v3475_v41 }
 0x6dc   : > { %3266 = vmatpush3.msra.mxu1 %v3476_v11 }
 0x6dd   : > { %3267 = vmatprep.subr.mxu1 %v3477_v44 }
 0x6de   : > { %3268 = vmatpush3.msra.mxu1 %v3478_v9 }
 0x6df   : > { %3269 = vmatprep.subr.mxu1 %v3479_v50 }
 0x6e0   : > { %3270 = vmatpush3.msra.mxu1 %v3480_v32 }
 0x6e1   : > { %3271 = vmatprep.subr.mxu1 %v3481_v10 }
 0x6e2   : > { %3272 = vmatpush3.msra.mxu1 %v3482_v15 }
 0x6e3   : > { %3273 = vmatprep.subr.mxu1 %v3483_v19 }
 0x6e4   : > { %3274 = vmatpush3.msra.mxu1 %v3484_v34 }
 0x6e5   : > { %3275 = vmatprep.subr.mxu1 %v3485_v20  ;;  %v3490_v20 = vld [vmem:[#allocation10] sm:$0xff] }
 0x6e6   : > { %3276 = vmatpush3.msra.mxu1 %v3486_v51  ;;  %v3491_v51 = vld [vmem:[#allocation10 + $0x8] sm:$0xff] }
 0x6e7   : > { %3277 = vmatprep.subr.mxu1 %v3487_v16 }
 0x6e8   : > { %3278 = vmatpush3.msra.mxu1 %v3488_v17 }
 0x765   : > { %v2279_v18 = vpop.f32.mrf.mxu1 }
 0x766   : > { %v2358_v24 = vmul.f32 %v2279_v18, %v2279_v18  ;;  %v2362_v56 = vsub.f32 %v4810_v29, %v2279_v18  ;;  %v3489_v29 = vld [vmem:[#allocation8] sm:$0xff] }
 0x767   : > { %v2281_v23 = vpop.f32.mrf.mxu1  ;;  %v771_v47 = vrot.slane %v3489_v29, %v770_v4  ;;  %v775_v49 = vrot.slane %v3489_v29, %v774_v7 }
 0x768   : > { %v2359_v25 = vmul.f32 %v2281_v23, %v2281_v23  ;;  %v2363_v60 = vsub.f32 %v4812_v52, %v2281_v23  ;;  %v5287_v52 = vld [vmem:[#allocation54_spill] sm:$0xff] }
 0x769   : > { %v2353_v0 = vpop.f32.mrf.mxu1  ;;  %v1064_v42 = vadd.f32 %v5287_v52, %v771_v47  ;;  %v1066_v45 = vadd.f32 %v5288_v43, %v775_v49 }
 0x76a   : > { %v2360_v57 = vsub.f32 %v2353_v0, %v2358_v24 }
 0x76b   : > { %v2355_v58 = vpop.f32.mrf.mxu1 }
 0x76c   : > { %v2364_v53 = vadd.f32 3.125e-07, %v2360_v57  ;;  %v2361_v54 = vsub.f32 %v2355_v58, %v2359_v25 }
 0x76e   : > { %3413 = vrsqrt.f32 %v2364_v53  ;;  %v2365_v55 = vadd.f32 3.125e-07, %v2361_v54 }
 0x770   : > { %3415 = vrsqrt.f32 %v2365_v55 }
 0x77b   : > { %v3414_v59 = vpop.eup %3413 }
 0x77c   : > { %v2368_v62 = vmul.f32 %v3414_v59, %v2362_v56 }
 0x77d   : > { %v3416_v63 = vpop.eup %3415 }
 0x77e   : > { %v2370_v1 = vmul.f32 %v2368_v62, %v4587_v48  ;;  %v2369_v2 = vmul.f32 %v3416_v63, %v2363_v60 }
 0x780   : > { %v2371_v6 = vmul.f32 %v2369_v2, %v5284_v5  ;;  %v2372_v37 = vadd.f32 %v2370_v1, %v5285_v8 }
 0x782   : > { %v2373_v21 = vadd.f32 %v2371_v6, %v5286_v39 }
 0x784   : > { %v2376_v40 = vcombine.low %v2372_v37, %v2373_v21 }
 0x786   : > { %2991 = vst.sshfl [vmem:[%s4614_s4 + $0x8] sm:$0x33 pattern:$0x76325410] %v2376_v40 }
 0x789   : > { %v2452_v22 = vpop.f32.mrf.mxu1 }
 0x78a   : > { %v2457_v33 = vadd.f32 %v2452_v22, %v1064_v42 }
 0x78b   : > { %v2454_v31 = vpop.f32.mrf.mxu1 }
 0x78c   : > { %v2459_v28 = vmul.f32 %v2457_v33, %v2457_v33  ;;  %v2458_v46 = vadd.f32 %v2454_v31, %v1066_v45 }
 0x78e   : > { %v2461_v61 = vmul.f32 %v2459_v28, %v2457_v33  ;;  %v2460_v30 = vmul.f32 %v2458_v46, %v2458_v46 }
 0x790   : > { %v2463_v26 = vmul.f32 0.044715, %v2461_v61  ;;  %v2462_v12 = vmul.f32 %v2460_v30, %v2458_v46 }
 0x792   : > { %v2465_v35 = vadd.f32 %v2463_v26, %v2457_v33  ;;  %v2464_v14 = vmul.f32 0.044715, %v2462_v12 }
 0x794   : > { %v2467_v13 = vmul.f32 0.7978846, %v2465_v35  ;;  %v2466_v27 = vadd.f32 %v2464_v14, %v2458_v46 }
 0x796   : > { %3417 = vtanh.f32 %v2467_v13  ;;  %v2468_v38 = vmul.f32 0.7978846, %v2466_v27 }
 0x798   : > { %3419 = vtanh.f32 %v2468_v38 }
 0x7a3   : > { %v3418_v41 = vpop.eup %3417 }
 0x7a4   : > { %v2471_v11 = vadd.f32 1.0, %v3418_v41 }
 0x7a5   : > { %v3420_v44 = vpop.eup %3419 }
 0x7a6   : > { %v2472_v9 = vadd.f32 1.0, %v3420_v44  ;;  %v2473_v50 = vmul.f32 0.5, %v2471_v11 }
 0x7a8   : > { %v2474_v32 = vmul.f32 0.5, %v2472_v9  ;;  %v2475_v10 = vmul.f32 %v2473_v50, %v2457_v33 }
 0x7aa   : > { %v2476_v15 = vmul.f32 %v2474_v32, %v2458_v46  ;;  %v2547_v34 = vmul.f32 %v2475_v10, %v2475_v10 }
 0x7ac   : > { %2541 = vmatprep.mubr.f32.mxu0 %v2476_v15  ;;  %v2548_v19 = vmul.f32 %v2476_v15, %v2476_v15 }
 0x7ad   : > { %2542 = vmatmul.mubr.f32.vlgmr.msra.gmra.mxu0 %v2475_v10 }
 0x7ae   : > { %2613 = vmatprep.mubr.f32.mxu1 %v2548_v19  ;;  %2653 = vmatpush1.msra.mxu0 %v3490_v20 }
 0x7af   : > { %2614 = vmatmul.mubr.f32.vlgmr.msra.gmra.mxu1 %v2547_v34  ;;  %2686 = vmatprep.mubr.f32.mxu0 %v5208_v36 }
 0x7b0   : > { %2726 = vmatprep.subr.mxu0 %v3491_v51 }
 0x86d   : > { %v3244_v16 = vpop.f32.mrf.mxu0 }
 0x86f   : > { %v3245_v17 = vpop.f32.mrf.mxu0  ;;  %v3279_v18 = vpop.f32.mrf.mxu1 }
 0x870   : > { %v3246_v23 = vadd.f32 %v3245_v17, %v3244_v16 }
 0x871   : > { %v3280_v24 = vpop.f32.mrf.mxu1 }
 0x872   : > { %2992 = vmatmul.mubr.msk.f32.vlgmr.msra.gmra.mxu0 %vm1369_vm1, %v3246_v23  ;;  %v3281_v0 = vadd.f32 %v3280_v24, %v3279_v18 }
 0x873   : > { %2727 = vmatpush1.msra.mxu0 %v3490_v20  ;;  %2760 = vmatprep.mubr.f32.mxu0 %v5208_v36 }
 0x876   : > { %2993 = vmatmul.mubr.msk.f32.vlgmr.msra.gmra.mxu0 %vm1369_vm1, %v3281_v0 }
 0x932   : > { %v2688_v25 = vpop.f32.mrf.mxu0 }
 0x933   : > { %v2767_v58 = vmul.f32 %v2688_v25, %v2688_v25  ;;  %v2771_v63 = vsub.f32 %v2475_v10, %v2688_v25 }
 0x934   : > { %v2690_v57 = vpop.f32.mrf.mxu0 }
 0x935   : > { %v2768_v54 = vmul.f32 %v2690_v57, %v2690_v57  ;;  %v2772_v1 = vsub.f32 %v2476_v15, %v2690_v57 }
 0x936   : > { %v2762_v53 = vpop.f32.mrf.mxu0 }
 0x937   : > { %v2769_v55 = vsub.f32 %v2762_v53, %v2767_v58 }
 0x938   : > { %v2764_v56 = vpop.f32.mrf.mxu0 }
 0x939   : > { %v2773_v59 = vadd.f32 3.125e-07, %v2769_v55  ;;  %v2770_v60 = vsub.f32 %v2764_v56, %v2768_v54 }
 0x93b   : > { %3421 = vrsqrt.f32 %v2773_v59  ;;  %v2774_v62 = vadd.f32 3.125e-07, %v2770_v60 }
 0x93d   : > { %3423 = vrsqrt.f32 %v2774_v62 }
 0x948   : > { %v3422_v36 = vpop.eup %3421 }
 0x949   : > { %v2777_v2 = vmul.f32 %v3422_v36, %v2771_v63 }
 0x94a   : > { %v3424_v3 = vpop.eup %3423 }
 0x94b   : > { %v2779_v4 = vmul.f32 %v2777_v2, %v4587_v48  ;;  %v2778_v6 = vmul.f32 %v3424_v3, %v2772_v1 }
 0x94d   : > { %v2780_v7 = vmul.f32 %v2778_v6, %v5284_v5  ;;  %v2781_v37 = vadd.f32 %v2779_v4, %v5285_v8 }
 0x94f   : > { %v2782_v21 = vadd.f32 %v2780_v7, %v5286_v39 }
 0x951   : > { %v2785_v29 = vcombine.low %v2781_v37, %v2782_v21 }
 0x953   : > { %2994 = vst.sshfl [vmem:[%s4614_s4 + $0xc] sm:$0x33 pattern:$0x76325410] %v2785_v29 }
 0x954   : > { %3639 = shalt.err (!%p3636_p4)
}
 0x955   : > { %s3640_s27 = scalar_lea.hbm %s2810_s30, 256  ;;  %s3644_s29 = scalar_lea.hbm %s5078_s10, 1280 }
 0x956   : > { %p3641_p1 = scmp.ne.s32.totalorder %s2810_s30, %s3640_s27  ;;  %p3645_p6 = scmp.lt.s32.totalorder %s2810_s30, %s5078_s10 }
 0x957   : > { %p3646_p11 = scmp.lt.s32.totalorder %s3644_s29, %s3640_s27 }
 0x958   : > { %p3642_p8 = pnand %p3641_p1, %p3881_p3 }
 0x959   : > { %p3647_p13 = por %p3646_p11, %p3645_p6 }
 0x95a   : > { %p3643_p7 = pneg %p3642_p8 }
 0x95c   : > { %p3648_p0 = pnand %p3647_p13, %p3643_p7 }
 0x95e   : > { %3651 = shalt.err (!%p3648_p0)
}
 0x95f   : > { %3298 = dma.vmem_to_hbm [thread:$0]  (%p3881_p3), %s2813_s19, 256, %s2810_s30, %s2796_s24  }
 0x960 PF: > { %s5289_s17 = sld [smem:[#allocation17_spill]]  ;;  %p3328_p5 = scmp.ge.s32.totalorder %s3718_s18, 2 }
 0x961   : > { %s5290_s28 = sld [smem:[#allocation20_spill]] }
 0x966   : > { %s2824_s15 = sand.u32 1, %s5289_s17  }
 0x967   : > { %p5291_p10 = scmp.ne.s32.totalorder %s5290_s28, 0  ;;  %s2825_s7 = scalar_lea.sflag [#allocation4], %s2824_s15 }
 0x969   : > { %p3318_p9 = pnand %p3328_p5, %p5291_p10 }
 0x96b   : > { %p3319_p12 = pneg %p3318_p9 }
 0x96d   : > { %3693 = dma.done.wait (%p3319_p12), %s2825_s7, 256  }
 0x96e   : > { %3695 = vsyncadd (%p3319_p12), %s2825_s7, 4294967040  ;;  %s30_s18 = sadd.s32 1, %s3718_s18   ;;  %s5292_s23 = sld [smem:[#allocation18_spill]] }
 0x96f   : > { %p27_p2 = scmp.ge.s32.totalorder %s30_s18, 7   ;;  %s5293_s15 = sld [smem:[#allocation22_spill]] }
 0x970   : > { %s5294_s16 = sld [smem:[#allocation19_spill]]  ;;  %s5296_s13 = smov %s3702_s14 }
 0x971   : > { %s5295_s17 = sld [smem:[#allocation21_spill]]  ;;  %29 = sbr.rel (!%p27_p2) target bundleno = 14 (0xe), region = 133 }
 0x974   : > { %s5297_s14 = smov %s5292_s23 }
 0x976   :  { %2830 = vsyncpa [#allocation3], 1 }
 0x977   :  { %2832 = vsyncpa [#allocation3 + $0x1], 1 }
 0x978   :  { %2833 = vsyncpa [#allocation6], 1 }
 0x979   :  { %2835 = vsyncpa [#allocation6 + $0x1], 1 }
 0x97a   :  { %2836 = vsyncpa [#allocation9], 1 }
 0x97b   :  { %2837 = vsyncpa [#allocation4], 1 }
 0x97c   :  { %2839 = vsyncpa [#allocation4 + $0x1], 1 }

</bundles_post_ra>
